<compile_context>
chip_gen: v6e
topology: v6e:2x2x1
jax: 0.10.0
libtpu: 0.0.40
codegen_flags: <defaults>
</compile_context>

<pallas_src>
import jax
import jax.numpy as jnp
from jax.experimental import pallas as pl
from jax.experimental.pallas import tpu as pltpu

NODE_TYPES = ['content', 'comments', 'expert_comment', 'user_comment',
              'reporter_comment', 'user_to_expert', 'expert_to_user',
              'expert_to_reporter', 'user_to_reporter']
COMMENT_TYPES = [n for n in NODE_TYPES if n != 'content']   # 8 comment types
N_TYPES = len(COMMENT_TYPES)
QHID = 64                                                    # quality MLP hidden width


def _fusion_kernel(*refs):
    """One batch-tile of the full forward. refs =
       content, f0..f7, qw1, qb1, qw2, qb2, pw, pb, kw, kb, fused_out, quality_out."""
    content_ref = refs[0]
    feat_refs = refs[1:1 + N_TYPES]
    (qw1_ref, qb1_ref, qw2_ref, qb2_ref,
     pw_ref, pb_ref, kw_ref, kb_ref) = refs[1 + N_TYPES:1 + N_TYPES + 8]
    fused_ref, quality_ref = refs[-2:]

    tb = content_ref.shape[0]                                  # static tile size
    content = content_ref[...]                                 # [TB, D]
    feats = [feat_refs[n][...] for n in range(N_TYPES)]        # N x [TB, D]

    # ---- quality MLP, batched across the 8 types (2 MXU calls, not 16) ------
    x_all = jnp.concatenate(feats, axis=0)                     # [N*TB, D] (sublane concat)
    h = jnp.dot(x_all, qw1_ref[...],
                preferred_element_type=jnp.float32) + qb1_ref[...]     # [N*TB, QHID]
    h = jnp.maximum(h, 0.0)
    s = jnp.dot(h, qw2_ref[...],
                preferred_element_type=jnp.float32) + qb2_ref[...]     # [N*TB, 1]
    qual_all = 1.0 / (1.0 + jnp.exp(-s))                       # sigmoid (inf intermediate -> 0, no NaN)

    # ---- query projection ----------------------------------------------------
    q = jnp.dot(content, pw_ref[...],
                preferred_element_type=jnp.float32) + pb_ref[...]      # [TB, D]

    # ---- per-type key projection + quality-adjusted attention scores ---------
    scores = []
    quals = []
    for n in range(N_TYPES):                                   # static unroll, N=8
        k = jnp.dot(feats[n], kw_ref[n],
                    preferred_element_type=jnp.float32) + kb_ref[n]    # [TB, D]
        raw = jnp.sum(q * k, axis=1, keepdims=True)            # [TB, 1]
        qual = qual_all[n * tb:(n + 1) * tb, :]                # [TB, 1] (sublane slice)
        scores.append(raw * qual)
        quals.append(qual)

    # ---- 8-way softmax done elementwise (no width-1 concatenation) -----------
    m = scores[0]
    for n in range(1, N_TYPES):
        m = jnp.maximum(m, scores[n])
    exps = [jnp.exp(scores[n] - m) for n in range(N_TYPES)]
    denom = exps[0]
    for n in range(1, N_TYPES):
        denom = denom + exps[n]
    inv = 1.0 / denom                                          # denom >= 1, safe

    fused = (exps[0] * inv) * feats[0]
    for n in range(1, N_TYPES):
        fused = fused + (exps[n] * inv) * feats[n]
    fused_ref[...] = fused

    for n in range(N_TYPES):
        quality_ref[:, n:n + 1] = quals[n]


def _vmem_capacity_bytes():
    try:
        return int(pltpu.get_tpu_info().vmem_capacity_bytes)
    except Exception:
        return 64 * 1024 * 1024                                # conservative (v7x per-TC)


def quality_aware_attention_fusion(content_feat, comment_feats, params, *, block_b=256):
    """comment_feats: dict name -> [B, D]. Returns (fused [B,D], {name: [B]})."""
    B, D = content_feat.shape
    tb = B if B <= block_b else block_b
    grid = (pl.cdiv(B, tb),)
    f32 = jnp.float32

    feat_spec = pl.BlockSpec((tb, D), lambda b: (b, 0))

    def const_spec(shape):
        return pl.BlockSpec(shape, lambda b, _n=len(shape): (0,) * _n)

    in_specs = (
        [feat_spec] * (1 + N_TYPES)
        + [const_spec((D, QHID)), const_spec((1, QHID)),
           const_spec((QHID, 1)), const_spec((1, 1)),
           const_spec((D, D)), const_spec((1, D)),
           const_spec((N_TYPES, D, D)), const_spec((N_TYPES, 1, D))]
    )
    out_specs = (feat_spec, pl.BlockSpec((tb, N_TYPES), lambda b: (b, 0)))

    # VMEM budget: resident weights + double-buffered tiles + in-kernel temps.
    weight_bytes = 4 * (D * QHID + QHID + QHID + 1 + D * D + D
                        + N_TYPES * D * D + N_TYPES * D)
    tile_bytes = 4 * ((1 + N_TYPES) * tb * D + tb * D + tb * N_TYPES)
    temp_bytes = 4 * (N_TYPES * tb * (D + QHID) + 4 * tb * D)
    est = int(1.25 * (weight_bytes + 2 * tile_bytes + temp_bytes))
    vmem_limit = int(min(max(est, 32 * 1024 * 1024), (3 * _vmem_capacity_bytes()) // 4))
    # TODO(synk): if feature_dim is large enough that the 8 resident key-proj
    # matrices overflow this budget (D >~ 1024 on v7x), stream `kw` over an
    # extra "arbitrary" grid axis instead of keeping it fully VMEM-resident.

    fused, quality = pl.pallas_call(
        _fusion_kernel,
        out_shape=(jax.ShapeDtypeStruct((B, D), f32),
                   jax.ShapeDtypeStruct((B, N_TYPES), f32)),
        grid=grid,
        in_specs=in_specs,
        out_specs=out_specs,
        compiler_params=pltpu.CompilerParams(
            dimension_semantics=("parallel",),
            vmem_limit_bytes=vmem_limit),
    )(content_feat.astype(f32),
      *[comment_feats[n].astype(f32) for n in COMMENT_TYPES],
      params['qw1'], params['qb1'], params['qw2'], params['qb2'],
      params['pw'], params['pb'], params['kw'], params['kb'])

    quality_scores = {name: quality[:, i] for i, name in enumerate(COMMENT_TYPES)}
    return fused, quality_scores


def init_params(key, feature_dim):
    """Deterministic synthetic parameters matching the module's __init__ shapes."""
    ks = jax.random.split(key, 6)
    scale = 0.1
    params = {
        'qw1': scale * jax.random.normal(ks[0], (feature_dim, QHID), jnp.float32),
        'qb1': scale * jax.random.normal(ks[1], (1, QHID), jnp.float32),
        'qw2': scale * jax.random.normal(ks[2], (QHID, 1), jnp.float32),
        'qb2': scale * jax.random.normal(ks[3], (1, 1), jnp.float32),
        'pw': scale * jax.random.normal(ks[4], (feature_dim, feature_dim), jnp.float32),
        'pb': scale * jax.random.normal(ks[5], (1, feature_dim), jnp.float32),
    }
    kw_keys = jax.random.split(jax.random.fold_in(key, 123), N_TYPES)
    kb_keys = jax.random.split(jax.random.fold_in(key, 456), N_TYPES)
    params['kw'] = jnp.stack(
        [scale * jax.random.normal(k, (feature_dim, feature_dim), jnp.float32) for k in kw_keys], axis=0)
    params['kb'] = jnp.stack(
        [scale * jax.random.normal(k, (1, feature_dim), jnp.float32) for k in kb_keys], axis=0)
    return params


def reference_forward(content_feat, comment_feats, params):
    """Pure-JAX reference mirroring the PyTorch forward, for validation."""
    q = content_feat @ params['pw'] + params['pb'][0]
    scores, quals = [], {}
    for i, name in enumerate(COMMENT_TYPES):
        feat = comment_feats[name]
        h = jnp.maximum(feat @ params['qw1'] + params['qb1'][0], 0.0)
        s = h @ params['qw2'] + params['qb2'][0]
        qual = jax.nn.sigmoid(s)[:, 0]
        quals[name] = qual
        k = feat @ params['kw'][i] + params['kb'][i, 0]
        scores.append(jnp.sum(q * k, axis=1) * qual)
    score_mat = jnp.stack(scores, axis=1)
    w = jax.nn.softmax(score_mat, axis=1)
    fused = sum(w[:, i:i + 1] * comment_feats[name] for i, name in enumerate(COMMENT_TYPES))
    return fused, quals


if __name__ == "__main__":
    def run_case(B, D, seed, tol):
        key = jax.random.PRNGKey(seed)
        pkey, dkey = jax.random.split(key)
        params = init_params(pkey, D)
        dkeys = jax.random.split(dkey, N_TYPES + 1)
        content_feat = jax.random.normal(dkeys[0], (B, D), jnp.float32)
        comment_feats = {name: jax.random.normal(dkeys[i + 1], (B, D), jnp.float32)
                         for i, name in enumerate(COMMENT_TYPES)}

        fused, quality_scores = quality_aware_attention_fusion(content_feat, comment_feats, params)
        fused = jax.block_until_ready(fused)
        quality_scores = jax.tree_util.tree_map(jax.block_until_ready, quality_scores)

        fused_ref, quals_ref = reference_forward(content_feat, comment_feats, params)
        assert jnp.allclose(fused, fused_ref, atol=tol, rtol=tol), f"fused mismatch (B={B}, D={D})"
        for name in COMMENT_TYPES:
            assert jnp.allclose(quality_scores[name], quals_ref[name], atol=tol, rtol=tol), \
                f"quality mismatch for {name} (B={B}, D={D})"

    # Module-scale smoke test (single tile): deterministic PRNGKey(0), small shapes.
    run_case(B=2, D=32, seed=0, tol=1e-5)
    # Multi-tile grid path (tb=256, grid=(2,), parallel batch axis).
    run_case(B=512, D=32, seed=1, tol=1e-4)

    print("KERNEL_OK")
</pallas_src>

<mosaic_0001>
module attributes {stable_mosaic.version = 11 : i64} {
  func.func @_fusion_kernel(%arg0: i32, %arg1: memref<2x32xf32, #tpu.memory_space<vmem>>, %arg2: memref<2x32xf32, #tpu.memory_space<vmem>>, %arg3: memref<2x32xf32, #tpu.memory_space<vmem>>, %arg4: memref<2x32xf32, #tpu.memory_space<vmem>>, %arg5: memref<2x32xf32, #tpu.memory_space<vmem>>, %arg6: memref<2x32xf32, #tpu.memory_space<vmem>>, %arg7: memref<2x32xf32, #tpu.memory_space<vmem>>, %arg8: memref<2x32xf32, #tpu.memory_space<vmem>>, %arg9: memref<2x32xf32, #tpu.memory_space<vmem>>, %arg10: memref<32x64xf32, #tpu.memory_space<vmem>>, %arg11: memref<1x64xf32, #tpu.memory_space<vmem>>, %arg12: memref<64x1xf32, #tpu.memory_space<vmem>>, %arg13: memref<1x1xf32, #tpu.memory_space<vmem>>, %arg14: memref<32x32xf32, #tpu.memory_space<vmem>>, %arg15: memref<1x32xf32, #tpu.memory_space<vmem>>, %arg16: memref<8x32x32xf32, #tpu.memory_space<vmem>>, %arg17: memref<8x1x32xf32, #tpu.memory_space<vmem>>, %arg18: memref<2x32xf32, #tpu.memory_space<vmem>>, %arg19: memref<2x8xf32, #tpu.memory_space<vmem>>) attributes {dimension_semantics = [#tpu.dimension_semantics<parallel>], iteration_bounds = array<i64: 1>, scalar_prefetch = 0 : i64, scratch_operands = 0 : i64, tpu.core_type = #tpu.core_type<tc>, window_params = [{transform_indices = @transform_0, window_bounds = array<i64: 2, 32>}, {transform_indices = @transform_1, window_bounds = array<i64: 2, 32>}, {transform_indices = @transform_2, window_bounds = array<i64: 2, 32>}, {transform_indices = @transform_3, window_bounds = array<i64: 2, 32>}, {transform_indices = @transform_4, window_bounds = array<i64: 2, 32>}, {transform_indices = @transform_5, window_bounds = array<i64: 2, 32>}, {transform_indices = @transform_6, window_bounds = array<i64: 2, 32>}, {transform_indices = @transform_7, window_bounds = array<i64: 2, 32>}, {transform_indices = @transform_8, window_bounds = array<i64: 2, 32>}, {pipeline_mode = #tpu.pipeline_mode<synchronous>, transform_indices = @transform_9, window_bounds = array<i64: 32, 64>}, {pipeline_mode = #tpu.pipeline_mode<synchronous>, transform_indices = @transform_10, window_bounds = array<i64: 1, 64>}, {pipeline_mode = #tpu.pipeline_mode<synchronous>, transform_indices = @transform_11, window_bounds = array<i64: 64, 1>}, {pipeline_mode = #tpu.pipeline_mode<synchronous>, transform_indices = @transform_12, window_bounds = array<i64: 1, 1>}, {pipeline_mode = #tpu.pipeline_mode<synchronous>, transform_indices = @transform_13, window_bounds = array<i64: 32, 32>}, {pipeline_mode = #tpu.pipeline_mode<synchronous>, transform_indices = @transform_14, window_bounds = array<i64: 1, 32>}, {pipeline_mode = #tpu.pipeline_mode<synchronous>, transform_indices = @transform_15, window_bounds = array<i64: 8, 32, 32>}, {pipeline_mode = #tpu.pipeline_mode<synchronous>, transform_indices = @transform_16, window_bounds = array<i64: 8, 1, 32>}, {transform_indices = @transform_17, window_bounds = array<i64: 2, 32>}, {transform_indices = @transform_18, window_bounds = array<i64: 2, 8>}]} {
    %c0 = arith.constant 0 : index
    %c0_0 = arith.constant 0 : index
    %0 = vector.load %arg1[%c0, %c0_0] : memref<2x32xf32, #tpu.memory_space<vmem>>, vector<2x32xf32>
    %c0_1 = arith.constant 0 : index
    %c0_2 = arith.constant 0 : index
    %1 = vector.load %arg2[%c0_1, %c0_2] : memref<2x32xf32, #tpu.memory_space<vmem>>, vector<2x32xf32>
    %c0_3 = arith.constant 0 : index
    %c0_4 = arith.constant 0 : index
    %2 = vector.load %arg3[%c0_3, %c0_4] : memref<2x32xf32, #tpu.memory_space<vmem>>, vector<2x32xf32>
    %c0_5 = arith.constant 0 : index
    %c0_6 = arith.constant 0 : index
    %3 = vector.load %arg4[%c0_5, %c0_6] : memref<2x32xf32, #tpu.memory_space<vmem>>, vector<2x32xf32>
    %c0_7 = arith.constant 0 : index
    %c0_8 = arith.constant 0 : index
    %4 = vector.load %arg5[%c0_7, %c0_8] : memref<2x32xf32, #tpu.memory_space<vmem>>, vector<2x32xf32>
    %c0_9 = arith.constant 0 : index
    %c0_10 = arith.constant 0 : index
    %5 = vector.load %arg6[%c0_9, %c0_10] : memref<2x32xf32, #tpu.memory_space<vmem>>, vector<2x32xf32>
    %c0_11 = arith.constant 0 : index
    %c0_12 = arith.constant 0 : index
    %6 = vector.load %arg7[%c0_11, %c0_12] : memref<2x32xf32, #tpu.memory_space<vmem>>, vector<2x32xf32>
    %c0_13 = arith.constant 0 : index
    %c0_14 = arith.constant 0 : index
    %7 = vector.load %arg8[%c0_13, %c0_14] : memref<2x32xf32, #tpu.memory_space<vmem>>, vector<2x32xf32>
    %c0_15 = arith.constant 0 : index
    %c0_16 = arith.constant 0 : index
    %8 = vector.load %arg9[%c0_15, %c0_16] : memref<2x32xf32, #tpu.memory_space<vmem>>, vector<2x32xf32>
    %9 = tpu.concatenate %1, %2, %3, %4, %5, %6, %7, %8 in 0 : vector<2x32xf32>, vector<2x32xf32>, vector<2x32xf32>, vector<2x32xf32>, vector<2x32xf32>, vector<2x32xf32>, vector<2x32xf32>, vector<2x32xf32> -> vector<16x32xf32>
    %c0_17 = arith.constant 0 : index
    %c0_18 = arith.constant 0 : index
    %10 = vector.load %arg10[%c0_17, %c0_18] : memref<32x64xf32, #tpu.memory_space<vmem>>, vector<32x64xf32>
    %cst = arith.constant dense<0.000000e+00> : vector<16x64xf32>
    %11 = tpu.matmul %9, %10, %cst {dimension_numbers = #tpu.dot_dimension_numbers<[1], [0], [0], [1], [0, 0, 1, 1], [], []>} : vector<16x32xf32>, vector<32x64xf32>, vector<16x64xf32> -> vector<16x64xf32>
    %c0_19 = arith.constant 0 : index
    %c0_20 = arith.constant 0 : index
    %12 = vector.load %arg11[%c0_19, %c0_20] : memref<1x64xf32, #tpu.memory_space<vmem>>, vector<1x64xf32>
    %13 = vector.broadcast %12 : vector<1x64xf32> to vector<16x64xf32>
    %14 = arith.addf %11, %13 : vector<16x64xf32>
    %cst_21 = arith.constant 0.000000e+00 : f32
    %15 = vector.broadcast %cst_21 : f32 to vector<16x64xf32>
    %16 = arith.maximumf %14, %15 : vector<16x64xf32>
    %c0_22 = arith.constant 0 : index
    %c0_23 = arith.constant 0 : index
    %17 = vector.load %arg12[%c0_22, %c0_23] : memref<64x1xf32, #tpu.memory_space<vmem>>, vector<64x1xf32>
    %cst_24 = arith.constant dense<0.000000e+00> : vector<16x1xf32>
    %18 = tpu.matmul %16, %17, %cst_24 {dimension_numbers = #tpu.dot_dimension_numbers<[1], [0], [0], [1], [0, 0, 1, 1], [], []>} : vector<16x64xf32>, vector<64x1xf32>, vector<16x1xf32> -> vector<16x1xf32>
    %c0_25 = arith.constant 0 : index
    %c0_26 = arith.constant 0 : index
    %19 = vector.load %arg13[%c0_25, %c0_26] : memref<1x1xf32, #tpu.memory_space<vmem>>, vector<1x1xf32>
    %20 = vector.broadcast %19 : vector<1x1xf32> to vector<16x1xf32>
    %21 = arith.addf %18, %20 : vector<16x1xf32>
    %cst_27 = arith.constant 0.000000e+00 : f32
    %22 = vector.broadcast %cst_27 : f32 to vector<16x1xf32>
    %23 = arith.subf %22, %21 : vector<16x1xf32>
    %24 = math.exp %23 : vector<16x1xf32>
    %cst_28 = arith.constant 1.000000e+00 : f32
    %25 = vector.broadcast %cst_28 : f32 to vector<16x1xf32>
    %26 = arith.addf %25, %24 : vector<16x1xf32>
    %cst_29 = arith.constant 1.000000e+00 : f32
    %27 = vector.broadcast %cst_29 : f32 to vector<16x1xf32>
    %28 = arith.divf %27, %26 : vector<16x1xf32>
    %c0_30 = arith.constant 0 : index
    %c0_31 = arith.constant 0 : index
    %29 = vector.load %arg14[%c0_30, %c0_31] : memref<32x32xf32, #tpu.memory_space<vmem>>, vector<32x32xf32>
    %cst_32 = arith.constant dense<0.000000e+00> : vector<2x32xf32>
    %30 = tpu.matmul %0, %29, %cst_32 {dimension_numbers = #tpu.dot_dimension_numbers<[1], [0], [0], [1], [0, 0, 1, 1], [], []>} : vector<2x32xf32>, vector<32x32xf32>, vector<2x32xf32> -> vector<2x32xf32>
    %c0_33 = arith.constant 0 : index
    %c0_34 = arith.constant 0 : index
    %31 = vector.load %arg15[%c0_33, %c0_34] : memref<1x32xf32, #tpu.memory_space<vmem>>, vector<1x32xf32>
    %32 = vector.broadcast %31 : vector<1x32xf32> to vector<2x32xf32>
    %33 = arith.addf %30, %32 : vector<2x32xf32>
    %c0_35 = arith.constant 0 : index
    %c0_36 = arith.constant 0 : index
    %c0_37 = arith.constant 0 : index
    %34 = vector.load %arg16[%c0_35, %c0_36, %c0_37] : memref<8x32x32xf32, #tpu.memory_space<vmem>>, vector<1x32x32xf32>
    %35 = vector.shape_cast %34 : vector<1x32x32xf32> to vector<32x32xf32>
    %cst_38 = arith.constant dense<0.000000e+00> : vector<2x32xf32>
    %36 = tpu.matmul %1, %35, %cst_38 {dimension_numbers = #tpu.dot_dimension_numbers<[1], [0], [0], [1], [0, 0, 1, 1], [], []>} : vector<2x32xf32>, vector<32x32xf32>, vector<2x32xf32> -> vector<2x32xf32>
    %c0_39 = arith.constant 0 : index
    %c0_40 = arith.constant 0 : index
    %c0_41 = arith.constant 0 : index
    %37 = vector.load %arg17[%c0_39, %c0_40, %c0_41] : memref<8x1x32xf32, #tpu.memory_space<vmem>>, vector<1x1x32xf32>
    %38 = vector.shape_cast %37 : vector<1x1x32xf32> to vector<1x32xf32>
    %39 = vector.broadcast %38 : vector<1x32xf32> to vector<2x32xf32>
    %40 = arith.addf %36, %39 : vector<2x32xf32>
    %41 = arith.mulf %33, %40 : vector<2x32xf32>
    %cst_42 = arith.constant dense<0.000000e+00> : vector<2xf32>
    %42 = vector.multi_reduction <add>, %41, %cst_42 [1] : vector<2x32xf32> to vector<2xf32>
    %43 = vector.shape_cast %42 : vector<2xf32> to vector<2x1xf32>
    %44 = vector.extract_strided_slice %28 {offsets = [0, 0], sizes = [2, 1], strides = [1, 1]} : vector<16x1xf32> to vector<2x1xf32>
    %45 = arith.mulf %43, %44 : vector<2x1xf32>
    %c1 = arith.constant 1 : index
    %c0_43 = arith.constant 0 : index
    %c0_44 = arith.constant 0 : index
    %46 = vector.load %arg16[%c1, %c0_43, %c0_44] : memref<8x32x32xf32, #tpu.memory_space<vmem>>, vector<1x32x32xf32>
    %47 = vector.shape_cast %46 : vector<1x32x32xf32> to vector<32x32xf32>
    %cst_45 = arith.constant dense<0.000000e+00> : vector<2x32xf32>
    %48 = tpu.matmul %2, %47, %cst_45 {dimension_numbers = #tpu.dot_dimension_numbers<[1], [0], [0], [1], [0, 0, 1, 1], [], []>} : vector<2x32xf32>, vector<32x32xf32>, vector<2x32xf32> -> vector<2x32xf32>
    %c1_46 = arith.constant 1 : index
    %c0_47 = arith.constant 0 : index
    %c0_48 = arith.constant 0 : index
    %49 = vector.load %arg17[%c1_46, %c0_47, %c0_48] : memref<8x1x32xf32, #tpu.memory_space<vmem>>, vector<1x1x32xf32>
    %50 = vector.shape_cast %49 : vector<1x1x32xf32> to vector<1x32xf32>
    %51 = vector.broadcast %50 : vector<1x32xf32> to vector<2x32xf32>
    %52 = arith.addf %48, %51 : vector<2x32xf32>
    %53 = arith.mulf %33, %52 : vector<2x32xf32>
    %cst_49 = arith.constant dense<0.000000e+00> : vector<2xf32>
    %54 = vector.multi_reduction <add>, %53, %cst_49 [1] : vector<2x32xf32> to vector<2xf32>
    %55 = vector.shape_cast %54 : vector<2xf32> to vector<2x1xf32>
    %56 = vector.extract_strided_slice %28 {offsets = [2, 0], sizes = [2, 1], strides = [1, 1]} : vector<16x1xf32> to vector<2x1xf32>
    %57 = arith.mulf %55, %56 : vector<2x1xf32>
    %c2 = arith.constant 2 : index
    %c0_50 = arith.constant 0 : index
    %c0_51 = arith.constant 0 : index
    %58 = vector.load %arg16[%c2, %c0_50, %c0_51] : memref<8x32x32xf32, #tpu.memory_space<vmem>>, vector<1x32x32xf32>
    %59 = vector.shape_cast %58 : vector<1x32x32xf32> to vector<32x32xf32>
    %cst_52 = arith.constant dense<0.000000e+00> : vector<2x32xf32>
    %60 = tpu.matmul %3, %59, %cst_52 {dimension_numbers = #tpu.dot_dimension_numbers<[1], [0], [0], [1], [0, 0, 1, 1], [], []>} : vector<2x32xf32>, vector<32x32xf32>, vector<2x32xf32> -> vector<2x32xf32>
    %c2_53 = arith.constant 2 : index
    %c0_54 = arith.constant 0 : index
    %c0_55 = arith.constant 0 : index
    %61 = vector.load %arg17[%c2_53, %c0_54, %c0_55] : memref<8x1x32xf32, #tpu.memory_space<vmem>>, vector<1x1x32xf32>
    %62 = vector.shape_cast %61 : vector<1x1x32xf32> to vector<1x32xf32>
    %63 = vector.broadcast %62 : vector<1x32xf32> to vector<2x32xf32>
    %64 = arith.addf %60, %63 : vector<2x32xf32>
    %65 = arith.mulf %33, %64 : vector<2x32xf32>
    %cst_56 = arith.constant dense<0.000000e+00> : vector<2xf32>
    %66 = vector.multi_reduction <add>, %65, %cst_56 [1] : vector<2x32xf32> to vector<2xf32>
    %67 = vector.shape_cast %66 : vector<2xf32> to vector<2x1xf32>
    %68 = vector.extract_strided_slice %28 {offsets = [4, 0], sizes = [2, 1], strides = [1, 1]} : vector<16x1xf32> to vector<2x1xf32>
    %69 = arith.mulf %67, %68 : vector<2x1xf32>
    %c3 = arith.constant 3 : index
    %c0_57 = arith.constant 0 : index
    %c0_58 = arith.constant 0 : index
    %70 = vector.load %arg16[%c3, %c0_57, %c0_58] : memref<8x32x32xf32, #tpu.memory_space<vmem>>, vector<1x32x32xf32>
    %71 = vector.shape_cast %70 : vector<1x32x32xf32> to vector<32x32xf32>
    %cst_59 = arith.constant dense<0.000000e+00> : vector<2x32xf32>
    %72 = tpu.matmul %4, %71, %cst_59 {dimension_numbers = #tpu.dot_dimension_numbers<[1], [0], [0], [1], [0, 0, 1, 1], [], []>} : vector<2x32xf32>, vector<32x32xf32>, vector<2x32xf32> -> vector<2x32xf32>
    %c3_60 = arith.constant 3 : index
    %c0_61 = arith.constant 0 : index
    %c0_62 = arith.constant 0 : index
    %73 = vector.load %arg17[%c3_60, %c0_61, %c0_62] : memref<8x1x32xf32, #tpu.memory_space<vmem>>, vector<1x1x32xf32>
    %74 = vector.shape_cast %73 : vector<1x1x32xf32> to vector<1x32xf32>
    %75 = vector.broadcast %74 : vector<1x32xf32> to vector<2x32xf32>
    %76 = arith.addf %72, %75 : vector<2x32xf32>
    %77 = arith.mulf %33, %76 : vector<2x32xf32>
    %cst_63 = arith.constant dense<0.000000e+00> : vector<2xf32>
    %78 = vector.multi_reduction <add>, %77, %cst_63 [1] : vector<2x32xf32> to vector<2xf32>
    %79 = vector.shape_cast %78 : vector<2xf32> to vector<2x1xf32>
    %80 = vector.extract_strided_slice %28 {offsets = [6, 0], sizes = [2, 1], strides = [1, 1]} : vector<16x1xf32> to vector<2x1xf32>
    %81 = arith.mulf %79, %80 : vector<2x1xf32>
    %c4 = arith.constant 4 : index
    %c0_64 = arith.constant 0 : index
    %c0_65 = arith.constant 0 : index
    %82 = vector.load %arg16[%c4, %c0_64, %c0_65] : memref<8x32x32xf32, #tpu.memory_space<vmem>>, vector<1x32x32xf32>
    %83 = vector.shape_cast %82 : vector<1x32x32xf32> to vector<32x32xf32>
    %cst_66 = arith.constant dense<0.000000e+00> : vector<2x32xf32>
    %84 = tpu.matmul %5, %83, %cst_66 {dimension_numbers = #tpu.dot_dimension_numbers<[1], [0], [0], [1], [0, 0, 1, 1], [], []>} : vector<2x32xf32>, vector<32x32xf32>, vector<2x32xf32> -> vector<2x32xf32>
    %c4_67 = arith.constant 4 : index
    %c0_68 = arith.constant 0 : index
    %c0_69 = arith.constant 0 : index
    %85 = vector.load %arg17[%c4_67, %c0_68, %c0_69] : memref<8x1x32xf32, #tpu.memory_space<vmem>>, vector<1x1x32xf32>
    %86 = vector.shape_cast %85 : vector<1x1x32xf32> to vector<1x32xf32>
    %87 = vector.broadcast %86 : vector<1x32xf32> to vector<2x32xf32>
    %88 = arith.addf %84, %87 : vector<2x32xf32>
    %89 = arith.mulf %33, %88 : vector<2x32xf32>
    %cst_70 = arith.constant dense<0.000000e+00> : vector<2xf32>
    %90 = vector.multi_reduction <add>, %89, %cst_70 [1] : vector<2x32xf32> to vector<2xf32>
    %91 = vector.shape_cast %90 : vector<2xf32> to vector<2x1xf32>
    %92 = vector.extract_strided_slice %28 {offsets = [8, 0], sizes = [2, 1], strides = [1, 1]} : vector<16x1xf32> to vector<2x1xf32>
    %93 = arith.mulf %91, %92 : vector<2x1xf32>
    %c5 = arith.constant 5 : index
    %c0_71 = arith.constant 0 : index
    %c0_72 = arith.constant 0 : index
    %94 = vector.load %arg16[%c5, %c0_71, %c0_72] : memref<8x32x32xf32, #tpu.memory_space<vmem>>, vector<1x32x32xf32>
    %95 = vector.shape_cast %94 : vector<1x32x32xf32> to vector<32x32xf32>
    %cst_73 = arith.constant dense<0.000000e+00> : vector<2x32xf32>
    %96 = tpu.matmul %6, %95, %cst_73 {dimension_numbers = #tpu.dot_dimension_numbers<[1], [0], [0], [1], [0, 0, 1, 1], [], []>} : vector<2x32xf32>, vector<32x32xf32>, vector<2x32xf32> -> vector<2x32xf32>
    %c5_74 = arith.constant 5 : index
    %c0_75 = arith.constant 0 : index
    %c0_76 = arith.constant 0 : index
    %97 = vector.load %arg17[%c5_74, %c0_75, %c0_76] : memref<8x1x32xf32, #tpu.memory_space<vmem>>, vector<1x1x32xf32>
    %98 = vector.shape_cast %97 : vector<1x1x32xf32> to vector<1x32xf32>
    %99 = vector.broadcast %98 : vector<1x32xf32> to vector<2x32xf32>
    %100 = arith.addf %96, %99 : vector<2x32xf32>
    %101 = arith.mulf %33, %100 : vector<2x32xf32>
    %cst_77 = arith.constant dense<0.000000e+00> : vector<2xf32>
    %102 = vector.multi_reduction <add>, %101, %cst_77 [1] : vector<2x32xf32> to vector<2xf32>
    %103 = vector.shape_cast %102 : vector<2xf32> to vector<2x1xf32>
    %104 = vector.extract_strided_slice %28 {offsets = [10, 0], sizes = [2, 1], strides = [1, 1]} : vector<16x1xf32> to vector<2x1xf32>
    %105 = arith.mulf %103, %104 : vector<2x1xf32>
    %c6 = arith.constant 6 : index
    %c0_78 = arith.constant 0 : index
    %c0_79 = arith.constant 0 : index
    %106 = vector.load %arg16[%c6, %c0_78, %c0_79] : memref<8x32x32xf32, #tpu.memory_space<vmem>>, vector<1x32x32xf32>
    %107 = vector.shape_cast %106 : vector<1x32x32xf32> to vector<32x32xf32>
    %cst_80 = arith.constant dense<0.000000e+00> : vector<2x32xf32>
    %108 = tpu.matmul %7, %107, %cst_80 {dimension_numbers = #tpu.dot_dimension_numbers<[1], [0], [0], [1], [0, 0, 1, 1], [], []>} : vector<2x32xf32>, vector<32x32xf32>, vector<2x32xf32> -> vector<2x32xf32>
    %c6_81 = arith.constant 6 : index
    %c0_82 = arith.constant 0 : index
    %c0_83 = arith.constant 0 : index
    %109 = vector.load %arg17[%c6_81, %c0_82, %c0_83] : memref<8x1x32xf32, #tpu.memory_space<vmem>>, vector<1x1x32xf32>
    %110 = vector.shape_cast %109 : vector<1x1x32xf32> to vector<1x32xf32>
    %111 = vector.broadcast %110 : vector<1x32xf32> to vector<2x32xf32>
    %112 = arith.addf %108, %111 : vector<2x32xf32>
    %113 = arith.mulf %33, %112 : vector<2x32xf32>
    %cst_84 = arith.constant dense<0.000000e+00> : vector<2xf32>
    %114 = vector.multi_reduction <add>, %113, %cst_84 [1] : vector<2x32xf32> to vector<2xf32>
    %115 = vector.shape_cast %114 : vector<2xf32> to vector<2x1xf32>
    %116 = vector.extract_strided_slice %28 {offsets = [12, 0], sizes = [2, 1], strides = [1, 1]} : vector<16x1xf32> to vector<2x1xf32>
    %117 = arith.mulf %115, %116 : vector<2x1xf32>
    %c7 = arith.constant 7 : index
    %c0_85 = arith.constant 0 : index
    %c0_86 = arith.constant 0 : index
    %118 = vector.load %arg16[%c7, %c0_85, %c0_86] : memref<8x32x32xf32, #tpu.memory_space<vmem>>, vector<1x32x32xf32>
    %119 = vector.shape_cast %118 : vector<1x32x32xf32> to vector<32x32xf32>
    %cst_87 = arith.constant dense<0.000000e+00> : vector<2x32xf32>
    %120 = tpu.matmul %8, %119, %cst_87 {dimension_numbers = #tpu.dot_dimension_numbers<[1], [0], [0], [1], [0, 0, 1, 1], [], []>} : vector<2x32xf32>, vector<32x32xf32>, vector<2x32xf32> -> vector<2x32xf32>
    %c7_88 = arith.constant 7 : index
    %c0_89 = arith.constant 0 : index
    %c0_90 = arith.constant 0 : index
    %121 = vector.load %arg17[%c7_88, %c0_89, %c0_90] : memref<8x1x32xf32, #tpu.memory_space<vmem>>, vector<1x1x32xf32>
    %122 = vector.shape_cast %121 : vector<1x1x32xf32> to vector<1x32xf32>
    %123 = vector.broadcast %122 : vector<1x32xf32> to vector<2x32xf32>
    %124 = arith.addf %120, %123 : vector<2x32xf32>
    %125 = arith.mulf %33, %124 : vector<2x32xf32>
    %cst_91 = arith.constant dense<0.000000e+00> : vector<2xf32>
    %126 = vector.multi_reduction <add>, %125, %cst_91 [1] : vector<2x32xf32> to vector<2xf32>
    %127 = vector.shape_cast %126 : vector<2xf32> to vector<2x1xf32>
    %128 = vector.extract_strided_slice %28 {offsets = [14, 0], sizes = [2, 1], strides = [1, 1]} : vector<16x1xf32> to vector<2x1xf32>
    %129 = arith.mulf %127, %128 : vector<2x1xf32>
    %130 = arith.maximumf %45, %57 : vector<2x1xf32>
    %131 = arith.maximumf %130, %69 : vector<2x1xf32>
    %132 = arith.maximumf %131, %81 : vector<2x1xf32>
    %133 = arith.maximumf %132, %93 : vector<2x1xf32>
    %134 = arith.maximumf %133, %105 : vector<2x1xf32>
    %135 = arith.maximumf %134, %117 : vector<2x1xf32>
    %136 = arith.maximumf %135, %129 : vector<2x1xf32>
    %137 = arith.subf %45, %136 : vector<2x1xf32>
    %138 = math.exp %137 : vector<2x1xf32>
    %139 = arith.subf %57, %136 : vector<2x1xf32>
    %140 = math.exp %139 : vector<2x1xf32>
    %141 = arith.subf %69, %136 : vector<2x1xf32>
    %142 = math.exp %141 : vector<2x1xf32>
    %143 = arith.subf %81, %136 : vector<2x1xf32>
    %144 = math.exp %143 : vector<2x1xf32>
    %145 = arith.subf %93, %136 : vector<2x1xf32>
    %146 = math.exp %145 : vector<2x1xf32>
    %147 = arith.subf %105, %136 : vector<2x1xf32>
    %148 = math.exp %147 : vector<2x1xf32>
    %149 = arith.subf %117, %136 : vector<2x1xf32>
    %150 = math.exp %149 : vector<2x1xf32>
    %151 = arith.subf %129, %136 : vector<2x1xf32>
    %152 = math.exp %151 : vector<2x1xf32>
    %153 = arith.addf %138, %140 : vector<2x1xf32>
    %154 = arith.addf %153, %142 : vector<2x1xf32>
    %155 = arith.addf %154, %144 : vector<2x1xf32>
    %156 = arith.addf %155, %146 : vector<2x1xf32>
    %157 = arith.addf %156, %148 : vector<2x1xf32>
    %158 = arith.addf %157, %150 : vector<2x1xf32>
    %159 = arith.addf %158, %152 : vector<2x1xf32>
    %cst_92 = arith.constant 1.000000e+00 : f32
    %160 = vector.broadcast %cst_92 : f32 to vector<2x1xf32>
    %161 = arith.divf %160, %159 : vector<2x1xf32>
    %162 = arith.mulf %138, %161 : vector<2x1xf32>
    %163 = vector.broadcast %162 : vector<2x1xf32> to vector<2x32xf32>
    %164 = arith.mulf %163, %1 : vector<2x32xf32>
    %165 = arith.mulf %140, %161 : vector<2x1xf32>
    %166 = vector.broadcast %165 : vector<2x1xf32> to vector<2x32xf32>
    %167 = arith.mulf %166, %2 : vector<2x32xf32>
    %168 = arith.addf %164, %167 : vector<2x32xf32>
    %169 = arith.mulf %142, %161 : vector<2x1xf32>
    %170 = vector.broadcast %169 : vector<2x1xf32> to vector<2x32xf32>
    %171 = arith.mulf %170, %3 : vector<2x32xf32>
    %172 = arith.addf %168, %171 : vector<2x32xf32>
    %173 = arith.mulf %144, %161 : vector<2x1xf32>
    %174 = vector.broadcast %173 : vector<2x1xf32> to vector<2x32xf32>
    %175 = arith.mulf %174, %4 : vector<2x32xf32>
    %176 = arith.addf %172, %175 : vector<2x32xf32>
    %177 = arith.mulf %146, %161 : vector<2x1xf32>
    %178 = vector.broadcast %177 : vector<2x1xf32> to vector<2x32xf32>
    %179 = arith.mulf %178, %5 : vector<2x32xf32>
    %180 = arith.addf %176, %179 : vector<2x32xf32>
    %181 = arith.mulf %148, %161 : vector<2x1xf32>
    %182 = vector.broadcast %181 : vector<2x1xf32> to vector<2x32xf32>
    %183 = arith.mulf %182, %6 : vector<2x32xf32>
    %184 = arith.addf %180, %183 : vector<2x32xf32>
    %185 = arith.mulf %150, %161 : vector<2x1xf32>
    %186 = vector.broadcast %185 : vector<2x1xf32> to vector<2x32xf32>
    %187 = arith.mulf %186, %7 : vector<2x32xf32>
    %188 = arith.addf %184, %187 : vector<2x32xf32>
    %189 = arith.mulf %152, %161 : vector<2x1xf32>
    %190 = vector.broadcast %189 : vector<2x1xf32> to vector<2x32xf32>
    %191 = arith.mulf %190, %8 : vector<2x32xf32>
    %192 = arith.addf %188, %191 : vector<2x32xf32>
    %c0_93 = arith.constant 0 : index
    %c0_94 = arith.constant 0 : index
    %193 = vector.load %arg18[%c0_93, %c0_94] : memref<2x32xf32, #tpu.memory_space<vmem>>, vector<2x32xf32>
    tpu.vector_store %arg18[%c0_93, %c0_94], %192 {strides = array<i32>} : memref<2x32xf32, #tpu.memory_space<vmem>>, vector<2x32xf32>,
    %c0_95 = arith.constant 0 : index
    %c0_96 = arith.constant 0 : index
    %194 = vector.load %arg19[%c0_95, %c0_96] : memref<2x8xf32, #tpu.memory_space<vmem>>, vector<2x1xf32>
    tpu.vector_store %arg19[%c0_95, %c0_96], %44 {strides = array<i32>} : memref<2x8xf32, #tpu.memory_space<vmem>>, vector<2x1xf32>,
    %c0_97 = arith.constant 0 : index
    %c1_98 = arith.constant 1 : index
    %195 = vector.load %arg19[%c0_97, %c1_98] : memref<2x8xf32, #tpu.memory_space<vmem>>, vector<2x1xf32>
    tpu.vector_store %arg19[%c0_97, %c1_98], %56 {strides = array<i32>} : memref<2x8xf32, #tpu.memory_space<vmem>>, vector<2x1xf32>,
    %c0_99 = arith.constant 0 : index
    %c2_100 = arith.constant 2 : index
    %196 = vector.load %arg19[%c0_99, %c2_100] : memref<2x8xf32, #tpu.memory_space<vmem>>, vector<2x1xf32>
    tpu.vector_store %arg19[%c0_99, %c2_100], %68 {strides = array<i32>} : memref<2x8xf32, #tpu.memory_space<vmem>>, vector<2x1xf32>,
    %c0_101 = arith.constant 0 : index
    %c3_102 = arith.constant 3 : index
    %197 = vector.load %arg19[%c0_101, %c3_102] : memref<2x8xf32, #tpu.memory_space<vmem>>, vector<2x1xf32>
    tpu.vector_store %arg19[%c0_101, %c3_102], %80 {strides = array<i32>} : memref<2x8xf32, #tpu.memory_space<vmem>>, vector<2x1xf32>,
    %c0_103 = arith.constant 0 : index
    %c4_104 = arith.constant 4 : index
    %198 = vector.load %arg19[%c0_103, %c4_104] : memref<2x8xf32, #tpu.memory_space<vmem>>, vector<2x1xf32>
    tpu.vector_store %arg19[%c0_103, %c4_104], %92 {strides = array<i32>} : memref<2x8xf32, #tpu.memory_space<vmem>>, vector<2x1xf32>,
    %c0_105 = arith.constant 0 : index
    %c5_106 = arith.constant 5 : index
    %199 = vector.load %arg19[%c0_105, %c5_106] : memref<2x8xf32, #tpu.memory_space<vmem>>, vector<2x1xf32>
    tpu.vector_store %arg19[%c0_105, %c5_106], %104 {strides = array<i32>} : memref<2x8xf32, #tpu.memory_space<vmem>>, vector<2x1xf32>,
    %c0_107 = arith.constant 0 : index
    %c6_108 = arith.constant 6 : index
    %200 = vector.load %arg19[%c0_107, %c6_108] : memref<2x8xf32, #tpu.memory_space<vmem>>, vector<2x1xf32>
    tpu.vector_store %arg19[%c0_107, %c6_108], %116 {strides = array<i32>} : memref<2x8xf32, #tpu.memory_space<vmem>>, vector<2x1xf32>,
    %c0_109 = arith.constant 0 : index
    %c7_110 = arith.constant 7 : index
    %201 = vector.load %arg19[%c0_109, %c7_110] : memref<2x8xf32, #tpu.memory_space<vmem>>, vector<2x1xf32>
    tpu.vector_store %arg19[%c0_109, %c7_110], %128 {strides = array<i32>} : memref<2x8xf32, #tpu.memory_space<vmem>>, vector<2x1xf32>,
    return
  }
  func.func @transform_0(%arg0: i32) -> (i32, i32) {
    %c0_i32 = arith.constant 0 : i32
    %c0_i32_0 = arith.constant 0 : i32
    return %arg0, %c0_i32 : i32, i32
  }
  func.func @transform_1(%arg0: i32) -> (i32, i32) {
    %c0_i32 = arith.constant 0 : i32
    %c0_i32_0 = arith.constant 0 : i32
    return %arg0, %c0_i32 : i32, i32
  }
  func.func @transform_2(%arg0: i32) -> (i32, i32) {
    %c0_i32 = arith.constant 0 : i32
    %c0_i32_0 = arith.constant 0 : i32
    return %arg0, %c0_i32 : i32, i32
  }
  func.func @transform_3(%arg0: i32) -> (i32, i32) {
    %c0_i32 = arith.constant 0 : i32
    %c0_i32_0 = arith.constant 0 : i32
    return %arg0, %c0_i32 : i32, i32
  }
  func.func @transform_4(%arg0: i32) -> (i32, i32) {
    %c0_i32 = arith.constant 0 : i32
    %c0_i32_0 = arith.constant 0 : i32
    return %arg0, %c0_i32 : i32, i32
  }
  func.func @transform_5(%arg0: i32) -> (i32, i32) {
    %c0_i32 = arith.constant 0 : i32
    %c0_i32_0 = arith.constant 0 : i32
    return %arg0, %c0_i32 : i32, i32
  }
  func.func @transform_6(%arg0: i32) -> (i32, i32) {
    %c0_i32 = arith.constant 0 : i32
    %c0_i32_0 = arith.constant 0 : i32
    return %arg0, %c0_i32 : i32, i32
  }
  func.func @transform_7(%arg0: i32) -> (i32, i32) {
    %c0_i32 = arith.constant 0 : i32
    %c0_i32_0 = arith.constant 0 : i32
    return %arg0, %c0_i32 : i32, i32
  }
  func.func @transform_8(%arg0: i32) -> (i32, i32) {
    %c0_i32 = arith.constant 0 : i32
    %c0_i32_0 = arith.constant 0 : i32
    return %arg0, %c0_i32 : i32, i32
  }
  func.func @transform_9(%arg0: i32) -> (i32, i32) {
    %c0_i32 = arith.constant 0 : i32
    %c0_i32_0 = arith.constant 0 : i32
    %c0_i32_1 = arith.constant 0 : i32
    return %c0_i32, %c0_i32_0 : i32, i32
  }
  func.func @transform_10(%arg0: i32) -> (i32, i32) {
    %c0_i32 = arith.constant 0 : i32
    %c0_i32_0 = arith.constant 0 : i32
    %c0_i32_1 = arith.constant 0 : i32
    return %c0_i32, %c0_i32_0 : i32, i32
  }
  func.func @transform_11(%arg0: i32) -> (i32, i32) {
    %c0_i32 = arith.constant 0 : i32
    %c0_i32_0 = arith.constant 0 : i32
    %c0_i32_1 = arith.constant 0 : i32
    return %c0_i32, %c0_i32_0 : i32, i32
  }
  func.func @transform_12(%arg0: i32) -> (i32, i32) {
    %c0_i32 = arith.constant 0 : i32
    %c0_i32_0 = arith.constant 0 : i32
    %c0_i32_1 = arith.constant 0 : i32
    return %c0_i32, %c0_i32_0 : i32, i32
  }
  func.func @transform_13(%arg0: i32) -> (i32, i32) {
    %c0_i32 = arith.constant 0 : i32
    %c0_i32_0 = arith.constant 0 : i32
    %c0_i32_1 = arith.constant 0 : i32
    return %c0_i32, %c0_i32_0 : i32, i32
  }
  func.func @transform_14(%arg0: i32) -> (i32, i32) {
    %c0_i32 = arith.constant 0 : i32
    %c0_i32_0 = arith.constant 0 : i32
    %c0_i32_1 = arith.constant 0 : i32
    return %c0_i32, %c0_i32_0 : i32, i32
  }
  func.func @transform_15(%arg0: i32) -> (i32, i32, i32) {
    %c0_i32 = arith.constant 0 : i32
    %c0_i32_0 = arith.constant 0 : i32
    %c0_i32_1 = arith.constant 0 : i32
    %c0_i32_2 = arith.constant 0 : i32
    return %c0_i32, %c0_i32_0, %c0_i32_1 : i32, i32, i32
  }
  func.func @transform_16(%arg0: i32) -> (i32, i32, i32) {
    %c0_i32 = arith.constant 0 : i32
    %c0_i32_0 = arith.constant 0 : i32
    %c0_i32_1 = arith.constant 0 : i32
    %c0_i32_2 = arith.constant 0 : i32
    return %c0_i32, %c0_i32_0, %c0_i32_1 : i32, i32, i32
  }
  func.func @transform_17(%arg0: i32) -> (i32, i32) {
    %c0_i32 = arith.constant 0 : i32
    %c0_i32_0 = arith.constant 0 : i32
    return %arg0, %c0_i32 : i32, i32
  }
  func.func @transform_18(%arg0: i32) -> (i32, i32) {
    %c0_i32 = arith.constant 0 : i32
    %c0_i32_0 = arith.constant 0 : i32
    return %arg0, %c0_i32 : i32, i32
  }
}

</mosaic_0001>

<bundles_post_ra>
// kernel: tpu_custom_call.1
= control target key start
LH: loop header
LB: loop body
LE: loop exit
PB: predicated region body
PF: predicated region fallthrough
CT: control target
= control target key end

     0   :  { %s2189_s0 = inlined_call_operand.hbm [shape: f32[2,32], index: 0, kind: input, shape index: {}]   ;;  %s2190_s1 = inlined_call_operand.hbm [shape: f32[2,32], index: 1, kind: input, shape index: {}]   ;;  %s2191_s2 = inlined_call_operand.hbm [shape: f32[2,32], index: 2, kind: input, shape index: {}]   ;;  %s2192_s3 = inlined_call_operand.hbm [shape: f32[2,32], index: 3, kind: input, shape index: {}]   ;;  %s2193_s4 = inlined_call_operand.vmem [shape: f32[2,32], index: 4, kind: input, shape index: {}]   ;;  %s2194_s5 = inlined_call_operand.vmem [shape: f32[2,32], index: 5, kind: input, shape index: {}]   ;;  %s2195_s6 = inlined_call_operand.hbm [shape: f32[2,32], index: 6, kind: input, shape index: {}]   ;;  %s2196_s7 = inlined_call_operand.vmem [shape: f32[2,32], index: 7, kind: input, shape index: {}]   ;;  %s2197_s8 = inlined_call_operand.vmem [shape: f32[2,32], index: 8, kind: input, shape index: {}]   ;;  %s2198_s9 = inlined_call_operand.vmem [shape: f32[32,64], index: 9, kind: input, shape index: {}]   ;;  %s2199_s10 = inlined_call_operand.vmem [shape: f32[1,64], index: 10, kind: input, shape index: {}]   ;;  %s2200_s11 = inlined_call_operand.vmem [shape: f32[64,1], index: 11, kind: input, shape index: {}]   ;;  %s2201_s12 = inlined_call_operand.<no memory space> [shape: f32[1,1], index: 12, kind: input, shape index: {}]   ;;  %s2202_s13 = inlined_call_operand.vmem [shape: f32[32,32], index: 13, kind: input, shape index: {}]   ;;  %s2203_s14 = inlined_call_operand.vmem [shape: f32[1,32], index: 14, kind: input, shape index: {}]   ;;  %s2204_s15 = inlined_call_operand.hbm [shape: f32[8,32,32], index: 15, kind: input, shape index: {}]   ;;  %s2205_s16 = inlined_call_operand.vmem [shape: f32[8,1,32], index: 16, kind: input, shape index: {}]   ;;  %s2206_s17 = inlined_call_operand.hbm [shape: f32[2,32], index: 17, kind: output, shape index: {0}]   ;;  %s2207_s18 = inlined_call_operand.hbm [shape: f32[2,8], index: 18, kind: output, shape index: {1}]  }
   0x1   :  { %2208 = sst [smem:[#allocation23_spill]] %s2189_s0  ;;  %v24_v0 = vstv %s2201_s12 }
   0x2   :  { %2209 = sst [smem:[#allocation24_spill]] %s2190_s1  ;;  %25 = vst [vmem:[#allocation2] sm:$0x1] %v24_v0 }
   0x3   :  { %2210 = sst [smem:[#allocation25_spill]] %s2191_s2 }
   0x4   :  { %26 = vsyncpa [#allocation4], 0 }
   0x5   :  { %27 = vsyncpa [#allocation7], 0 }
   0x6   :  { %28 = vsyncpa [#allocation10], 0 }
   0x7   :  { %29 = vsyncpa [#allocation13], 0 }
   0x8   :  { %30 = vsyncpa [#allocation5], 0 }
   0x9   :  { %31 = vsyncpa [#allocation16], 0  ;;  %s1807_s29 = smov [#allocation6]   ;;  %s1808_s0 = smov [#allocation9]  }
   0xa   :  { %s48_s30 = sshll.u32 %s1807_s29, 4  ;;  %s68_s19 = sshll.u32 %s1808_s0, 4  ;;  %s49_s30 = int_to_ptr.vmem [resolvable:$true] %s48_s30  ;;  %s69_s19 = int_to_ptr.vmem [resolvable:$true] %s68_s19 }
   0xb   :  { %s1643_s1 = scalar_lea.vmem %s49_s30, 32  ;;  %p1648_p1 = scmp.lt.s32.totalorder %s49_s30, %s49_s30 }
   0xc   :  { %p1644_p0 = scmp.ne.s32.totalorder %s49_s30, %s1643_s1  ;;  %p1649_p2 = scmp.lt.s32.totalorder %s1643_s1, %s1643_s1 }
   0xe   :  { %p1650_p3 = por %p1649_p2, %p1648_p1 }
  0x10   :  { %p1651_p4 = pnand %p1650_p3, %p1644_p0 }
  0x12   :  { %1654 = shalt.err (!%p1651_p4)
}
  0x13   :  { %s2211_s21 = sld [smem:[#allocation24_spill]]  ;;  %s1663_s22 = scalar_lea.vmem %s69_s19, 32 }
  0x14   :  { %p1664_p5 = scmp.ne.s32.totalorder %s69_s19, %s1663_s22  ;;  %p1668_p6 = scmp.lt.s32.totalorder %s69_s19, %s69_s19 }
  0x15   :  { %p1669_p7 = scmp.lt.s32.totalorder %s1663_s22, %s1663_s22 }
  0x17   :  { %p1670_p8 = por %p1669_p7, %p1668_p6 }
  0x19   :  { %51 = dma.hbm_to_vmem [thread:$0]  %s2211_s21, 32, %s49_s30, [#allocation7]  }
  0x1a   :  { %p1671_p9 = pnand %p1670_p8, %p1664_p5 }
  0x1c   :  { %1674 = shalt.err (!%p1671_p9)
}
  0x1d   :  { %71 = dma.hbm_to_vmem [thread:$0]  %s2192_s3, 32, %s69_s19, [#allocation10]  }
  0x1e   :  { %s1809_s24 = smov [#allocation3]   ;;  %s1810_s26 = smov [#allocation8]  }
  0x1f   :  { %s38_s25 = sshll.u32 %s1809_s24, 4  ;;  %s58_s27 = sshll.u32 %s1810_s26, 4  ;;  %s39_s25 = int_to_ptr.vmem [resolvable:$true] %s38_s25  ;;  %s59_s27 = int_to_ptr.vmem [resolvable:$true] %s58_s27 }
  0x20   :  { %s1683_s28 = scalar_lea.vmem %s39_s25, 32  ;;  %p1688_p11 = scmp.lt.s32.totalorder %s39_s25, %s39_s25 }
  0x21   :  { %p1684_p10 = scmp.ne.s32.totalorder %s39_s25, %s1683_s28  ;;  %p1689_p12 = scmp.lt.s32.totalorder %s1683_s28, %s1683_s28 }
  0x23   :  { %p1690_p13 = por %p1689_p12, %p1688_p11 }
  0x25   :  { %p1691_p0 = pnand %p1690_p13, %p1684_p10 }
  0x27   :  { %1694 = shalt.err (!%p1691_p0)
}
  0x28   :  { %s2212_s0 = sld [smem:[#allocation23_spill]]  ;;  %s1703_s1 = scalar_lea.vmem %s59_s27, 32 }
  0x29   :  { %p1704_p1 = scmp.ne.s32.totalorder %s59_s27, %s1703_s1  ;;  %p1708_p2 = scmp.lt.s32.totalorder %s59_s27, %s59_s27 }
  0x2a   :  { %p1709_p3 = scmp.lt.s32.totalorder %s1703_s1, %s1703_s1 }
  0x2c   :  { %p1710_p4 = por %p1709_p3, %p1708_p2 }
  0x2e   :  { %41 = dma.hbm_to_vmem [thread:$0]  %s2212_s0, 32, %s39_s25, [#allocation4]  }
  0x2f   :  { %p1711_p5 = pnand %p1710_p4, %p1704_p1 }
  0x31   :  { %1714 = shalt.err (!%p1711_p5)
}
  0x32   :  { %s2213_s12 = sld [smem:[#allocation25_spill]]  ;;  %s1811_s20 = smov [#allocation11]  }
  0x33   :  { %s82_s21 = sshll.u32 %s1811_s20, 4  ;;  %s1812_s22 = smov [#allocation12]   ;;  %s83_s21 = int_to_ptr.vmem [resolvable:$true] %s82_s21 }
  0x34   :  { %s107_s2 = sshll.u32 %s1812_s22, 4  ;;  %s1723_s23 = scalar_lea.vmem %s83_s21, 32  ;;  %s108_s2 = int_to_ptr.vmem [resolvable:$true] %s107_s2 }
  0x35   :  { %p1724_p6 = scmp.ne.s32.totalorder %s83_s21, %s1723_s23  ;;  %p1728_p7 = scmp.lt.s32.totalorder %s83_s21, %s83_s21 }
  0x36   :  { %p1729_p8 = scmp.lt.s32.totalorder %s1723_s23, %s1723_s23 }
  0x38   :  { %61 = dma.hbm_to_vmem [thread:$0]  %s2213_s12, 32, %s59_s27, [#allocation7]  }
  0x39   :  { %p1730_p9 = por %p1729_p8, %p1728_p7 }
  0x3b   :  { %p1731_p10 = pnand %p1730_p9, %p1724_p6 }
  0x3d   :  { %1734 = shalt.err (!%p1731_p10)
}
  0x3e   :  { %85 = dma.hbm_to_vmem [thread:$0]  %s2195_s6, 32, %s83_s21, [#allocation10]  }
  0x3f   :  { %s1743_s26 = scalar_lea.vmem %s108_s2, 4096  ;;  %p1748_p12 = scmp.lt.s32.totalorder %s108_s2, %s108_s2 }
  0x40   :  { %p1744_p11 = scmp.ne.s32.totalorder %s108_s2, %s1743_s26  ;;  %p1749_p13 = scmp.lt.s32.totalorder %s1743_s26, %s1743_s26 }
  0x42   :  { %p1750_p0 = por %p1749_p13, %p1748_p12 }
  0x44   :  { %p1751_p1 = pnand %p1750_p0, %p1744_p11 }
  0x46   :  { %1754 = shalt.err (!%p1751_p1)
}
  0x47   :  { %s1813_s27 = smov 128   ;;  %s1814_s28 = smov 8  }
  0x48   :  { %113 = dma.hbm_to_vmem [thread:$0]  %s2204_s15, 4096, %s108_s2, [#allocation13], %s1813_s27, %s1813_s27, %s1814_s28  }
  0x49   :  { %1795 = dma.done.wait [#allocation4], 32  }
  0x4a   :  { %1796 = vsyncadd [#allocation4], 4294967264 }
  0x4b   :  { %1797 = dma.done.wait [#allocation7], 64  }
  0x4c   :  { %1798 = vsyncadd [#allocation7], 4294967232 }
  0x4d   :  { %1799 = dma.done.wait [#allocation10], 64  }
  0x4e   :  { %1800 = vsyncadd [#allocation10], 4294967232 }
  0x4f   :  { %1801 = dma.done.wait [#allocation13], 4096  }
  0x50   :  { %1802 = vsyncadd [#allocation13], 4294963200  ;;  %v173_v1 = vld [vmem:[%s2198_s9 + $0x18] sm:$0xff]  ;;  %v172_v2 = vld [vmem:[%s2198_s9 + $0x10] sm:$0xff]  ;;  %vm161_vm0 = vcmask 1041408   ;;  %vm163_vm1 = vcmask 1043456  }
  0x51   :  { %1458 = vmatprep.subr.mxu0 %v173_v1  ;;  %v1949_v3 = vld [vmem:[#allocation6] sm:$0x3]  ;;  %v1951_v4 = vld [vmem:[#allocation8] sm:$0x3]  ;;  %vm165_vm2 = vcmask 1045504   ;;  %vm181_vm3 = vcmask 261120  }
  0x52   :  { %1459 = vmatpush3.msra.mxu0 %v173_v1  ;;  %v171_v5 = vld [vmem:[%s2198_s9 + $0x8] sm:$0xff]  ;;  %v1961_v7 = vld [vmem:[%s2193_s4] sm:$0x3]  ;;  %v144_v8 = vrot.slane %v1951_v4, 6  ;;  %v377_v24 = vld [vmem:[%s2202_s13 + $0x18] sm:$0xff]  ;;  %v1815_v27 = vmov 0.0  }
  0x53   :  { %v1956_v6 = vld [vmem:[#allocation9] sm:$0x3]  ;;  %1460 = vmatprep.subr.mxu0 %v172_v2  ;;  %v150_v10 = vrot.slane %v1961_v7, 2  ;;  %v1969_v11 = vld [vmem:[%s2194_s5] sm:$0x3]  ;;  %v272_v26 = vld [vmem:[%s2200_s11 + $0x38] sm:$0xff] }
  0x54   :  { %v147_v9 = vrot.slane %v1956_v6, 4  ;;  %v1971_v12 = vld [vmem:[#allocation11] sm:$0x3]  ;;  %1461 = vmatpush3.msra.mxu0 %v172_v2  ;;  %v170_v13 = vld [vmem:[%s2198_s9] sm:$0xff]  ;;  %v162_v14 = vsel %vm161_vm0, %v1949_v3, %v144_v8  ;;  %v376_v28 = vld [vmem:[%s2202_s13 + $0x10] sm:$0xff]  ;;  %vm1816_vm4 = vmmov 0   ;;  %1469 = vmatprep.subr.mxu1 %v272_v26 }
  0x55   :  { %v1981_v15 = vld [vmem:[%s2196_s7] sm:$0x3]  ;;  %v153_v17 = vrot.slane %v1971_v12, 6  ;;  %1462 = vmatprep.subr.mxu0 %v171_v5  ;;  %v271_v29 = vld [vmem:[%s2200_s11 + $0x30] sm:$0xff]  ;;  %v375_v30 = vld [vmem:[%s2202_s13 + $0x8] sm:$0xff]  ;;  %1470 = vmatpush3.msra.mxu1 %v272_v26  ;;  %vm280_vm5 = vcmask 523264  }
  0x56   :  { %v1986_v16 = vld [vmem:[%s2197_s8] sm:$0x3]  ;;  %v164_v18 = vsel %vm163_vm1, %v162_v14, %v147_v9  ;;  %v156_v19 = vrot.slane %v1981_v15, 4  ;;  %1463 = vmatpush3.msra.mxu0 %v171_v5  ;;  %v270_v31 = vld [vmem:[%s2200_s11 + $0x28] sm:$0xff]  ;;  %1471 = vmatprep.subr.mxu1 %v271_v29  ;;  %v268_v37 = vld [vmem:[%s2200_s11 + $0x18] sm:$0xff]  ;;  %vm543_vm6 = vcmask 254976  }
  0x57   :  { %v159_v20 = vrot.slane %v1986_v16, 2  ;;  %v166_v21 = vsel %vm165_vm2, %v164_v18, %v150_v10  ;;  %v167_v22 = vsel %vm161_vm0, %v1969_v11, %v153_v17  ;;  %1464 = vmatprep.subr.mxu0 %v170_v13  ;;  %v374_v32 = vld [vmem:[%s2202_s13] sm:$0xff]  ;;  %1472 = vmatpush3.msra.mxu1 %v271_v29  ;;  %v459_v38 = vld [vmem:[#allocation12 + $0x8] sm:$0xff]  ;;  %v458_v39 = vld [vmem:[#allocation12] sm:$0xff]  ;;  %vm1297_vm7 = vcmask 1024   ;;  %s1817_s13 = smov 1  }
  0x58   :  { %1466 = vmatprep.mubr.msk.f32.mxu0 %vm181_vm3, %v166_v21  ;;  %v168_v23 = vsel %vm163_vm1, %v167_v22, %v156_v19  ;;  %1465 = vmatpush3.msra.mxu0 %v170_v13  ;;  %v134_v33 = vld [vmem:[#allocation3] sm:$0x3]  ;;  %v461_v34 = vld [vmem:[#allocation12 + $0x18] sm:$0xff]  ;;  %v643_v42 = vld [vmem:[#allocation12 + $0x48] sm:$0xff]  ;;  %vm1302_vm8 = vcmask 11274   ;;  %s1820_s21 = smov 4  }
  0x59   :  { %v169_v25 = vsel %vm165_vm2, %v168_v23, %v159_v20  ;;  %1488 = vmatprep.subr.mxu0 %v1815_v27  ;;  %1473 = vmatprep.subr.mxu1 %v270_v31  ;;  %v269_v35 = vld [vmem:[%s2200_s11 + $0x20] sm:$0xff]  ;;  %v642_v43 = vld [vmem:[#allocation12 + $0x40] sm:$0xff]  ;;  %v827_v46 = vld [vmem:[#allocation12 + $0x88] sm:$0xff]  ;;  %s1821_s22 = smov 6   ;;  %s1822_s2 = smov 3   ;;  %vm1307_vm9 = vcmask 21524  }
  0x5a   :  { %1467 = vmatmul.mubr.msk.f32.vlgmr.msra.gmra.mxu0 %vm181_vm3, %v169_v25  ;;  %1474 = vmatpush3.msra.mxu1 %v270_v31  ;;  %v460_v36 = vld [vmem:[#allocation12 + $0x10] sm:$0xff]  ;;  %v645_v40 = vld [vmem:[#allocation12 + $0x58] sm:$0xff]  ;;  %v826_v47 = vld [vmem:[#allocation12 + $0x80] sm:$0xff]  ;;  %s1823_s23 = smov 5   ;;  %s1824_s4 = smov 7   ;;  %vm1312_vm10 = vcmask 31774  }
  0x5b   :  { %1489 = vmatpush3.msra.mxu0 %v377_v24  ;;  %1496 = vmatprep.mubr.msk.f32.mxu0 %vm1816_vm4, %v1815_v27  ;;  %v644_v41 = vld [vmem:[#allocation12 + $0x50] sm:$0xff]  ;;  %v829_v44 = vld [vmem:[#allocation12 + $0x98] sm:$0xff]  ;;  %v267_v49 = vld [vmem:[%s2200_s11 + $0x10] sm:$0xff]  ;;  %s1825_s24 = smov [#allocation14]   ;;  %vm1317_vm11 = vcmask 33824   ;;  %vm1322_vm12 = vcmask 44074  }
  0x5c   :  { %1490 = vmatprep.subr.mxu0 %v1815_v27  ;;  %1475 = vmatprep.subr.mxu1 %v269_v35  ;;  %v828_v45 = vld [vmem:[#allocation12 + $0x90] sm:$0xff]  ;;  %v1013_v48 = vld [vmem:[#allocation12 + $0xd8] sm:$0xff]  ;;  %v1011_v52 = vld [vmem:[#allocation12 + $0xc8] sm:$0xff]  ;;  %s1340_s25 = sshll.u32 %s1825_s24, 4  ;;  %s1341_s25 = int_to_ptr.vmem [resolvable:$true] %s1340_s25 }
  0x5d   :  { %1491 = vmatpush3.msra.mxu0 %v376_v28  ;;  %1476 = vmatpush3.msra.mxu1 %v269_v35  ;;  %v1012_v50 = vld [vmem:[#allocation12 + $0xd0] sm:$0xff]  ;;  %v266_v51 = vld [vmem:[%s2200_s11 + $0x8] sm:$0xff]  ;;  %v550_v1 = vld [vmem:[#allocation12 + $0x28] sm:$0xff]  ;;  %s1755_s26 = scalar_lea.vmem %s1341_s25, 32  ;;  %p1760_p3 = scmp.lt.s32.totalorder %s1341_s25, %s1341_s25 }
  0x5e   :  { %1492 = vmatprep.subr.mxu0 %v1815_v27  ;;  %1477 = vmatprep.subr.mxu1 %v268_v37  ;;  %v265_v53 = vld [vmem:[%s2200_s11] sm:$0xff]  ;;  %v1010_v54 = vld [vmem:[#allocation12 + $0xc0] sm:$0xff]  ;;  %v735_v19 = vld [vmem:[#allocation12 + $0x68] sm:$0xff]  ;;  %p1756_p2 = scmp.ne.s32.totalorder %s1341_s25, %s1755_s26  ;;  %p1761_p4 = scmp.lt.s32.totalorder %s1755_s26, %s1755_s26 }
  0x5f   :  { %1493 = vmatpush3.msra.mxu0 %v375_v30  ;;  %1478 = vmatpush3.msra.mxu1 %v268_v37  ;;  %v1366_v55 = vld [vmem:[%s2199_s10] ss:$0 sm:$0xff]  ;;  %v552_v62 = vld [vmem:[#allocation12 + $0x38] sm:$0xff]  ;;  %v549_v5 = vld [vmem:[#allocation12 + $0x20] sm:$0xff] }
  0x60   :  { %1494 = vmatprep.subr.mxu0 %v1815_v27  ;;  %1479 = vmatprep.subr.mxu1 %v267_v49  ;;  %v551_v63 = vld [vmem:[#allocation12 + $0x30] sm:$0xff]  ;;  %v737_v9 = vld [vmem:[#allocation12 + $0x78] sm:$0xff]  ;;  %v734_v22 = vld [vmem:[#allocation12 + $0x60] sm:$0xff]  ;;  %p1762_p5 = por %p1761_p4, %p1760_p3 }
  0x61   :  { %1495 = vmatpush3.msra.mxu0 %v374_v32  ;;  %1480 = vmatpush3.msra.mxu1 %v267_v49  ;;  %v1372_v8 = vld [vmem:[%s2203_s14] ss:$0 sm:$0xff]  ;;  %v920_v24 = vld [vmem:[#allocation12 + $0xb8] sm:$0xff]  ;;  %v1380_v25 = vld [vmem:[%s2205_s16 + $0x2] ss:$0 sm:$0xff] }
  0x62   :  { %1499 = vmatprep.subr.mxu0 %v1815_v27  ;;  %1497 = vmatmul.mubr.msk.f32.vlgmr.msra.gmra.mxu0 %vm181_vm3, %v134_v33  ;;  %v1374_v10 = vld [vmem:[%s2205_s16] ss:$0 sm:$0xff]  ;;  %v918_v30 = vld [vmem:[#allocation12 + $0xa8] sm:$0xff]  ;;  %v917_v33 = vld [vmem:[#allocation12 + $0xa0] sm:$0xff]  ;;  %p1763_p6 = pnand %p1762_p5, %p1756_p2 }
  0x63   :  { %1500 = vmatpush3.msra.mxu0 %v461_v34  ;;  %1507 = vmatprep.mubr.msk.f32.mxu0 %vm1816_vm4, %v1815_v27  ;;  %v736_v14 = vld [vmem:[#allocation12 + $0x70] sm:$0xff]  ;;  %v1105_v35 = vld [vmem:[#allocation12 + $0xf8] sm:$0xff] }
  0x64   :  { %1501 = vmatprep.subr.mxu0 %v1815_v27  ;;  %1481 = vmatprep.subr.mxu1 %v266_v51  ;;  %v919_v26 = vld [vmem:[#allocation12 + $0xb0] sm:$0xff]  ;;  %v1386_v49 = vld [vmem:[%s2205_s16 + $0x4] ss:$0 sm:$0xff] }
  0x65   :  { %1502 = vmatpush3.msra.mxu0 %v460_v36  ;;  %1482 = vmatpush3.msra.mxu1 %v266_v51  ;;  %v1104_v36 = vld [vmem:[#allocation12 + $0xf0] sm:$0xff] }
  0x66   :  { %1503 = vmatprep.subr.mxu0 %v1815_v27  ;;  %1483 = vmatprep.subr.mxu1 %v265_v53 }
  0x67   :  { %1504 = vmatpush3.msra.mxu0 %v459_v38  ;;  %1484 = vmatpush3.msra.mxu1 %v265_v53  ;;  %v1103_v38 = vld [vmem:[#allocation12 + $0xe8] sm:$0xff] }
  0x68   :  { %1505 = vmatprep.subr.mxu0 %v1815_v27  ;;  %1510 = vmatprep.subr.mxu1 %v1815_v27 }
  0x69   :  { %1506 = vmatpush3.msra.mxu0 %v458_v39 }
  0x6a   :  { %1521 = vmatprep.subr.mxu0 %v1815_v27  ;;  %1508 = vmatmul.mubr.msk.f32.vlgmr.msra.gmra.mxu0 %vm181_vm3, %v1949_v3 }
  0x6b   :  { %1522 = vmatpush3.msra.mxu0 %v645_v40  ;;  %1529 = vmatprep.mubr.msk.f32.mxu0 %vm1816_vm4, %v1815_v27  ;;  %v1102_v40 = vld [vmem:[#allocation12 + $0xe0] sm:$0xff] }
  0x6c   :  { %1523 = vmatprep.subr.mxu0 %v1815_v27 }
  0x6d   :  { %1524 = vmatpush3.msra.mxu0 %v644_v41 }
  0x6e   :  { %1525 = vmatprep.subr.mxu0 %v1815_v27 }
  0x6f   :  { %1526 = vmatpush3.msra.mxu0 %v643_v42 }
  0x70   :  { %1527 = vmatprep.subr.mxu0 %v1815_v27 }
  0x71   :  { %1528 = vmatpush3.msra.mxu0 %v642_v43  ;;  %v1369_v43 = vld [vmem:[#allocation2] ss:$0 sm:$0xff] }
  0x72   :  { %1530 = vmatmul.mubr.msk.f32.vlgmr.msra.gmra.mxu0 %vm181_vm3, %v1956_v6  ;;  %1543 = vmatprep.subr.mxu0 %v1815_v27 }
  0x73   :  { %1544 = vmatpush3.msra.mxu0 %v829_v44  ;;  %1551 = vmatprep.mubr.msk.f32.mxu0 %vm1816_vm4, %v1815_v27 }
  0x74   :  { %1545 = vmatprep.subr.mxu0 %v1815_v27 }
  0x75   :  { %1546 = vmatpush3.msra.mxu0 %v828_v45 }
  0x76   :  { %1547 = vmatprep.subr.mxu0 %v1815_v27 }
  0x77   :  { %1548 = vmatpush3.msra.mxu0 %v827_v46 }
  0x78   :  { %1549 = vmatprep.subr.mxu0 %v1815_v27 }
  0x79   :  { %1550 = vmatpush3.msra.mxu0 %v826_v47 }
  0x7a   :  { %1565 = vmatprep.subr.mxu0 %v1815_v27  ;;  %1552 = vmatmul.mubr.msk.f32.vlgmr.msra.gmra.mxu0 %vm181_vm3, %v1969_v11 }
  0x7b   :  { %1566 = vmatpush3.msra.mxu0 %v1013_v48  ;;  %1573 = vmatprep.mubr.msk.f32.mxu0 %vm1816_vm4, %v1815_v27 }
  0x7c   :  { %1567 = vmatprep.subr.mxu0 %v1815_v27 }
  0x7d   :  { %1568 = vmatpush3.msra.mxu0 %v1012_v50 }
  0x7e   :  { %1569 = vmatprep.subr.mxu0 %v1815_v27 }
  0x7f   :  { %1570 = vmatpush3.msra.mxu0 %v1011_v52 }
  0x80   :  { %1571 = vmatprep.subr.mxu0 %v1815_v27 }
  0x81   :  { %1572 = vmatpush3.msra.mxu0 %v1010_v54  ;;  %v1392_v54 = vld [vmem:[%s2205_s16 + $0x6] ss:$0 sm:$0xff] }
  0x82   :  { %1574 = vmatmul.mubr.msk.f32.vlgmr.msra.gmra.mxu0 %vm181_vm3, %v1981_v15 }
 0x11a   :  { %v1468_v56 = vpop.f32.mrf.mxu0 }
 0x11b   :  { %v260_v57 = vadd.f32 %v1468_v56, %v1366_v55 }
 0x11c   :  { %v254_v58 = vpop.f32.mrf.mxu0 }
 0x11d   :  { %v255_v59 = vadd.f32 %v1366_v55, %v254_v58  ;;  %v264_v61 = vmax.f32 %v260_v57, 0.0 }
 0x11f   :  { %v263_v60 = vmax.f32 %v255_v59, 0.0 }
 0x121   :  { %1485 = vmatprep.mubr.msk.f32.mxu1 %vm280_vm5, %v263_v60  ;;  %v1383_v60 = vld [vmem:[%s2205_s16 + $0x3] ss:$0 sm:$0xff] }
 0x122   :  { %1486 = vmatmul.mubr.msk.f32.vlgmr.msra.gmra.mxu1 %vm280_vm5, %v264_v61  ;;  %v454_v0 = vpop.f32.mrf.mxu0 }
 0x123   :  { %1511 = vmatpush3.msra.mxu1 %v552_v62  ;;  %1518 = vmatprep.mubr.msk.f32.mxu1 %vm1816_vm4, %v1815_v27  ;;  %v2089_v13 = vadd.f32 %v1372_v8, %v454_v0 }
 0x124   :  { %1512 = vmatprep.subr.mxu1 %v1815_v27  ;;  %v1498_v2 = vpop.f32.mrf.mxu0 }
 0x125   :  { %1513 = vmatpush3.msra.mxu1 %v551_v63 }
 0x126   :  { %1514 = vmatprep.subr.mxu1 %v1815_v27 }
 0x127   :  { %1515 = vmatpush3.msra.mxu1 %v550_v1 }
 0x128   :  { %1516 = vmatprep.subr.mxu1 %v1815_v27 }
 0x129   :  { %1517 = vmatpush3.msra.mxu1 %v549_v5 }
 0x12a   :  { %1519 = vmatmul.mubr.msk.f32.vlgmr.msra.gmra.mxu1 %vm181_vm3, %v1951_v4  ;;  %1532 = vmatprep.subr.mxu1 %v1815_v27  ;;  %v538_v17 = vpop.f32.mrf.mxu0 }
 0x12b   :  { %1533 = vmatpush3.msra.mxu1 %v737_v9  ;;  %1540 = vmatprep.mubr.msk.f32.mxu1 %vm1816_vm4, %v1815_v27  ;;  %v539_v18 = vadd.f32 %v1374_v10, %v538_v17  ;;  %v1389_v10 = vld [vmem:[%s2205_s16 + $0x5] ss:$0 sm:$0xff] }
 0x12c   :  { %1534 = vmatprep.subr.mxu1 %v1815_v27  ;;  %v1509_v20 = vpop.f32.mrf.mxu0 }
 0x12d   :  { %1535 = vmatpush3.msra.mxu1 %v736_v14  ;;  %v542_v21 = vmul.f32 %v539_v18, %v2089_v13 }
 0x12e   :  { %1536 = vmatprep.subr.mxu1 %v1815_v27 }
 0x12f   :  { %1537 = vmatpush3.msra.mxu1 %v735_v19  ;;  %v544_v23 = vsel %vm543_vm6, %v542_v21, 0.0 }
 0x130   :  { %1538 = vmatprep.subr.mxu1 %v1815_v27  ;;  %545 = vadd.xlane.f32.xlu0 %v544_v23 }
 0x131   :  { %1539 = vmatpush3.msra.mxu1 %v734_v22  ;;  %v1395_v22 = vld [vmem:[%s2205_s16 + $0x7] ss:$0 sm:$0xff] }
 0x132   :  { %1541 = vmatmul.mubr.msk.f32.vlgmr.msra.gmra.mxu1 %vm181_vm3, %v1961_v7  ;;  %1554 = vmatprep.subr.mxu1 %v1815_v27  ;;  %v722_v28 = vpop.f32.mrf.mxu0 }
 0x133   :  { %1555 = vmatpush3.msra.mxu1 %v920_v24  ;;  %1562 = vmatprep.mubr.msk.f32.mxu1 %vm1816_vm4, %v1815_v27  ;;  %v723_v29 = vadd.f32 %v1380_v25, %v722_v28 }
 0x134   :  { %1556 = vmatprep.subr.mxu1 %v1815_v27  ;;  %v1531_v31 = vpop.f32.mrf.mxu0 }
 0x135   :  { %1557 = vmatpush3.msra.mxu1 %v919_v26  ;;  %v726_v32 = vmul.f32 %v723_v29, %v2089_v13 }
 0x136   :  { %1558 = vmatprep.subr.mxu1 %v1815_v27 }
 0x137   :  { %1559 = vmatpush3.msra.mxu1 %v918_v30  ;;  %v727_v34 = vsel %vm543_vm6, %v726_v32, 0.0  ;;  %v1818_v30 = vmov 0  }
 0x138   :  { %1560 = vmatprep.subr.mxu1 %v1815_v27  ;;  %728 = vadd.xlane.f32.xlu1 %v727_v34 }
 0x139   :  { %1561 = vmatpush3.msra.mxu1 %v917_v33  ;;  %1608 = vset.pattern.permute.xlu1 %v1818_v30 }
 0x13a   :  { %1563 = vmatmul.mubr.msk.f32.vlgmr.msra.gmra.mxu1 %vm181_vm3, %v1971_v12  ;;  %1576 = vmatprep.subr.mxu1 %v1815_v27  ;;  %v907_v37 = vpop.f32.mrf.mxu0 }
 0x13b   :  { %1577 = vmatpush3.msra.mxu1 %v1105_v35  ;;  %1584 = vmatprep.mubr.msk.f32.mxu1 %vm1816_vm4, %v1815_v27  ;;  %v908_v52 = vadd.f32 %v1386_v49, %v907_v37 }
 0x13c   :  { %1578 = vmatprep.subr.mxu1 %v1815_v27  ;;  %v1553_v39 = vpop.f32.mrf.mxu0  ;;  %1607 = vset.pattern.permute.xlu0 %v1818_v30 }
 0x13d   :  { %1579 = vmatpush3.msra.mxu1 %v1104_v36  ;;  %v911_v59 = vmul.f32 %v908_v52, %v2089_v13 }
 0x13e   :  { %1580 = vmatprep.subr.mxu1 %v1815_v27 }
 0x13f   :  { %1581 = vmatpush3.msra.mxu1 %v1103_v38  ;;  %v912_v63 = vsel %vm543_vm6, %v911_v59, 0.0 }
 0x140   :  { %1582 = vmatprep.subr.mxu1 %v1815_v27  ;;  %v1377_v27 = vld [vmem:[%s2205_s16 + $0x1] ss:$0 sm:$0xff]  ;;  %s1819_s16 = smov 2  }
 0x141   :  { %1583 = vmatpush3.msra.mxu1 %v1102_v40 }
 0x142   :  { %1585 = vmatmul.mubr.msk.f32.vlgmr.msra.gmra.mxu1 %vm181_vm3, %v1986_v16  ;;  %v1090_v41 = vpop.f32.mrf.mxu0 }
 0x143   :  { %v1091_v57 = vadd.f32 %v1392_v54, %v1090_v41 }
 0x144   :  { %v1575_v42 = vpop.f32.mrf.mxu0 }
 0x145   :  { %v1094_v0 = vmul.f32 %v1091_v57, %v2089_v13 }
 0x147   :  { %v1095_v8 = vsel %vm543_vm6, %v1094_v0, 0.0 }
 0x1c1   :  { %v729_v37 = vpop.xlane.xlu1 %728 }
 0x1e2   :  { %v1487_v44 = vpop.f32.mrf.mxu1 }
 0x1e3   :  { %v359_v45 = vadd.f32 %v1487_v44, %v1369_v43 }
 0x1e4   :  { %v353_v46 = vpop.f32.mrf.mxu1 }
 0x1e5   :  { %v354_v47 = vadd.f32 %v1369_v43, %v353_v46  ;;  %v363_v31 = vsub.f32 0.0, %v359_v45 }
 0x1e7   :  { %v362_v48 = vsub.f32 0.0, %v354_v47  ;;  %v366_v32 = vmul.f32 1.442695, %v363_v31 }
 0x1e9   :  { %v364_v50 = vmul.f32 1.442695, %v362_v48 }
 0x1ea   :  { %v629_v51 = vpop.f32.mrf.mxu1 }
 0x1eb   :  { %1609 = vpow2.f32 %v364_v50  ;;  %v630_v53 = vadd.f32 %v1377_v27, %v629_v51 }
 0x1ec   :  { %v1520_v55 = vpop.f32.mrf.mxu1 }
 0x1ed   :  { %v633_v56 = vmul.f32 %v630_v53, %v2089_v13 }
 0x1ef   :  { %v634_v58 = vsel %vm543_vm6, %v633_v56, 0.0 }
 0x1f0   :  { %635 = vadd.xlane.f32.xlu0 %v634_v58 }
 0x1f2   :  { %v814_v61 = vpop.f32.mrf.mxu1 }
 0x1f3   :  { %v815_v62 = vadd.f32 %v1383_v60, %v814_v61 }
 0x1f4   :  { %v1542_v1 = vpop.f32.mrf.mxu1  ;;  %913 = vadd.xlane.f32.xlu0 %v912_v63 }
 0x1f5   :  { %v818_v2 = vmul.f32 %v815_v62, %v2089_v13 }
 0x1f7   :  { %v819_v5 = vsel %vm543_vm6, %v818_v2, 0.0 }
 0x1f8   :  { %v1610_v9 = vpop.eup %1609  ;;  %820 = vadd.xlane.f32.xlu1 %v819_v5  ;;  %1096 = vadd.xlane.f32.xlu0 %v1095_v8 }
 0x1f9   :  { %v368_v14 = vadd.f32 1.0, %v1610_v9 }
 0x1fa   :  { %v997_v17 = vpop.f32.mrf.mxu1 }
 0x1fb   :  { %1611 = vrcp.f32 %v368_v14  ;;  %v998_v18 = vadd.f32 %v1389_v10, %v997_v17 }
 0x1fc   :  { %v1564_v19 = vpop.f32.mrf.mxu1  ;;  %1613 = vpow2.f32 %v366_v32 }
 0x1fd   :  { %v1001_v20 = vmul.f32 %v998_v18, %v2089_v13 }
 0x1ff   :  { %v1002_v21 = vsel %vm543_vm6, %v1001_v20, 0.0 }
 0x200   :  { %1003 = vadd.xlane.f32.xlu1 %v1002_v21 }
 0x202   :  { %v1182_v23 = vpop.f32.mrf.mxu1 }
 0x203   :  { %v1183_v24 = vadd.f32 %v1395_v22, %v1182_v23 }
 0x204   :  { %v1586_v25 = vpop.f32.mrf.mxu1 }
 0x205   :  { %v1186_v26 = vmul.f32 %v1183_v24, %v2089_v13  ;;  %v546_v13 = vpop.xlane.xlu0 %545 }
 0x207   :  { %v1187_v28 = vsel %vm543_vm6, %v1186_v26, 0.0 }
 0x208   :  { %v2154_v29 = vpop.eup %1611  ;;  %1188 = vadd.xlane.f32.xlu1 %v1187_v28 }
 0x209   :  { %1298 = vst.msk [vmem:[#allocation15] sm:$0x3] %vm1297_vm7, %v2154_v29  ;;  %v1614_v33 = vpop.eup %1613  ;;  %v638_v36 = vrot.slane %v2154_v29, 2  ;;  %v547_v39 = vmul.f32 %v2154_v29, %v546_v13  ;;  %v730_v40 = vrot.slane %v2154_v29, 4  ;;  %v822_v43 = vrot.slane %v2154_v29, 6 }
 0x20a   :  { %v369_v34 = vadd.f32 1.0, %v1614_v33 }
 0x20b   :  { %v732_v44 = vmul.f32 %v730_v40, %v729_v37 }
 0x20c   :  { %1615 = vrcp.f32 %v369_v34 }
 0x219   :  { %1299 = vrot.lane.b32.xlu1 %v2154_v29, %s1817_s13  ;;  %v2162_v46 = vpop.eup %1615 }
 0x21a   :  { %v1006_v27 = vrot.slane %v2162_v46, 2  ;;  %v1098_v55 = vrot.slane %v2162_v46, 4  ;;  %v1190_v58 = vrot.slane %v2162_v46, 6 }
 0x279   :  { %v636_v35 = vpop.xlane.xlu0 %635 }
 0x27a   :  { %v640_v38 = vmul.f32 %v638_v36, %v636_v35 }
 0x27c   :  { %v1193_v42 = vmax.f32 %v547_v39, %v640_v38 }
 0x27d   :  { %v914_v48 = vpop.xlane.xlu0 %913 }
 0x27e   :  { %v1194_v47 = vmax.f32 %v1193_v42, %v732_v44  ;;  %v915_v51 = vmul.f32 %v2162_v46, %v914_v48 }
 0x281   :  { %v821_v41 = vpop.xlane.xlu1 %820  ;;  %v1097_v54 = vpop.xlane.xlu0 %1096 }
 0x282   :  { %v824_v45 = vmul.f32 %v822_v43, %v821_v41  ;;  %v1100_v57 = vmul.f32 %v1098_v55, %v1097_v54 }
 0x284   :  { %v1195_v49 = vmax.f32 %v1194_v47, %v824_v45 }
 0x286   :  { %v1196_v53 = vmax.f32 %v1195_v49, %v915_v51 }
 0x289   :  { %v1004_v50 = vpop.xlane.xlu1 %1003 }
 0x28a   :  { %v1008_v52 = vmul.f32 %v1006_v27, %v1004_v50 }
 0x28c   :  { %v1197_v56 = vmax.f32 %v1196_v53, %v1008_v52 }
 0x28e   :  { %v1198_v61 = vmax.f32 %v1197_v56, %v1100_v57 }
 0x291   :  { %v1189_v59 = vpop.xlane.xlu1 %1188 }
 0x292   :  { %v1192_v60 = vmul.f32 %v1190_v58, %v1189_v59 }
 0x294   :  { %v1199_v62 = vmax.f32 %v1198_v61, %v1192_v60 }
 0x295   :  { %v1300_v63 = vpop.permute.xlu1 %1299 }
 0x296   :  { %v1200_v0 = vsub.f32 %v547_v39, %v1199_v62  ;;  %v1203_v1 = vsub.f32 %v640_v38, %v1199_v62  ;;  %v1206_v2 = vsub.f32 %v732_v44, %v1199_v62  ;;  %1303 = vst.msk [vmem:[#allocation15 - $0x2] sm:$0xc] %vm1302_vm8, %v1300_v63  ;;  %v1209_v5 = vsub.f32 %v824_v45, %v1199_v62 }
 0x297   :  { %v1212_v14 = vsub.f32 %v915_v51, %v1199_v62  ;;  %v1215_v18 = vsub.f32 %v1008_v52, %v1199_v62  ;;  %v1218_v20 = vsub.f32 %v1100_v57, %v1199_v62  ;;  %v1221_v22 = vsub.f32 %v1192_v60, %v1199_v62 }
 0x298   :  { %v1201_v8 = vmul.f32 1.442695, %v1200_v0  ;;  %v1204_v9 = vmul.f32 1.442695, %v1203_v1  ;;  %v1207_v10 = vmul.f32 1.442695, %v1206_v2 }
 0x299   :  { %v1210_v17 = vmul.f32 1.442695, %v1209_v5  ;;  %v1213_v19 = vmul.f32 1.442695, %v1212_v14  ;;  %v1216_v21 = vmul.f32 1.442695, %v1215_v18 }
 0x29a   :  { %1617 = vpow2.f32 %v1201_v8  ;;  %v1219_v23 = vmul.f32 1.442695, %v1218_v20  ;;  %v1222_v24 = vmul.f32 1.442695, %v1221_v22 }
 0x29b   :  { %1619 = vpow2.f32 %v1204_v9 }
 0x29c   :  { %1621 = vpow2.f32 %v1207_v10 }
 0x29d   :  { %1623 = vpow2.f32 %v1210_v17 }
 0x29e   :  { %1625 = vpow2.f32 %v1213_v19 }
 0x29f   :  { %1627 = vpow2.f32 %v1216_v21 }
 0x2a0   :  { %1629 = vpow2.f32 %v1219_v23 }
 0x2a1   :  { %1631 = vpow2.f32 %v1222_v24 }
 0x2a7   :  { %v1618_v25 = vpop.eup %1617 }
 0x2a8   :  { %v1620_v26 = vpop.eup %1619 }
 0x2a9   :  { %v1224_v28 = vadd.f32 %v1620_v26, %v1618_v25  ;;  %v1622_v30 = vpop.eup %1621 }
 0x2aa   :  { %v1624_v32 = vpop.eup %1623 }
 0x2ab   :  { %v1225_v31 = vadd.f32 %v1622_v30, %v1224_v28  ;;  %v1626_v34 = vpop.eup %1625 }
 0x2ac   :  { %v1628_v35 = vpop.eup %1627 }
 0x2ad   :  { %v1226_v33 = vadd.f32 %v1624_v32, %v1225_v31  ;;  %v1630_v37 = vpop.eup %1629 }
 0x2ae   :  { %v1632_v39 = vpop.eup %1631 }
 0x2af   :  { %v1227_v13 = vadd.f32 %v1626_v34, %v1226_v33 }
 0x2b1   :  { %v1228_v36 = vadd.f32 %v1628_v35, %v1227_v13 }
 0x2b3   :  { %v1229_v38 = vadd.f32 %v1630_v37, %v1228_v36 }
 0x2b5   :  { %v1230_v40 = vadd.f32 %v1632_v39, %v1229_v38 }
 0x2b7   :  { %1633 = vrcp.f32 %v1230_v40 }
 0x2c4   :  { %v1634_v41 = vpop.eup %1633 }
 0x2c5   :  { %v1240_v42 = vmul.f32 %v1634_v41, %v1620_v26  ;;  %v1233_v43 = vmul.f32 %v1634_v41, %v1618_v25  ;;  %v1248_v44 = vmul.f32 %v1634_v41, %v1622_v30  ;;  %v1256_v45 = vmul.f32 %v1634_v41, %v1624_v32 }
 0x2c6   :  { %v1264_v47 = vmul.f32 %v1634_v41, %v1626_v34  ;;  %v1272_v48 = vmul.f32 %v1634_v41, %v1628_v35  ;;  %v1280_v49 = vmul.f32 %v1634_v41, %v1630_v37  ;;  %v1288_v27 = vmul.f32 %v1634_v41, %v1632_v39 }
 0x2c7   :  { %1243 = vperm.xlu1 %1608, %v1240_v42   ;;  %1236 = vperm.xlu0 %1607, %v1233_v43  }
 0x2cb   :  { %1251 = vperm.xlu1 %1608, %v1248_v44   ;;  %1304 = vrot.lane.b32.xlu0 %v2154_v29, %s1819_s16 }
 0x2cf   :  { %1259 = vperm.xlu1 %1608, %v1256_v45   ;;  %1314 = vrot.lane.b32.xlu0 %v2162_v46, %s1820_s21 }
 0x2d3   :  { %1267 = vperm.xlu1 %1608, %v1264_v47   ;;  %1324 = vrot.lane.b32.xlu0 %v2162_v46, %s1821_s22 }
 0x2d7   :  { %1275 = vperm.xlu1 %1608, %v1272_v48  }
 0x2db   :  { %1283 = vperm.xlu1 %1608, %v1280_v49  }
 0x2df   :  { %1291 = vperm.xlu1 %1608, %v1288_v27  }
 0x2e3   :  { %1309 = vrot.lane.b32.xlu1 %v2154_v29, %s1822_s2 }
 0x2e7   :  { %1319 = vrot.lane.b32.xlu1 %v2162_v46, %s1823_s23 }
 0x2eb   :  { %1329 = vrot.lane.b32.xlu1 %v2162_v46, %s1824_s4 }
 0x342   :  { %v1244_v50 = vpop.permute.xlu1 %1243  ;;  %v1237_v51 = vpop.permute.xlu0 %1236 }
 0x343   :  { %v1246_v55 = vmul.f32 %v1244_v50, %v1951_v4  ;;  %v1239_v56 = vmul.f32 %v1237_v51, %v1949_v3 }
 0x345   :  { %v1247_v58 = vadd.f32 %v1246_v55, %v1239_v56 }
 0x346   :  { %v1252_v52 = vpop.permute.xlu1 %1251  ;;  %v1305_v53 = vpop.permute.xlu0 %1304 }
 0x347   :  { %1308 = vst.msk [vmem:[#allocation15 - $0x4] sm:$0x30] %vm1307_vm9, %v1305_v53  ;;  %v1254_v29 = vmul.f32 %v1252_v52, %v1956_v6 }
 0x349   :  { %v1255_v61 = vadd.f32 %v1254_v29, %v1247_v58 }
 0x34a   :  { %v1260_v54 = vpop.permute.xlu1 %1259 }
 0x34b   :  { %v1262_v59 = vmul.f32 %v1260_v54, %v1961_v7  ;;  %v1315_v7 = vpop.permute.xlu0 %1314 }
 0x34d   :  { %v1263_v62 = vadd.f32 %v1262_v59, %v1255_v61 }
 0x34e   :  { %v1268_v57 = vpop.permute.xlu1 %1267 }
 0x34f   :  { %v1270_v46 = vmul.f32 %v1268_v57, %v1969_v11 }
 0x351   :  { %v1271_v1 = vadd.f32 %v1270_v46, %v1263_v62 }
 0x352   :  { %v1276_v60 = vpop.permute.xlu1 %1275 }
 0x353   :  { %v1278_v63 = vmul.f32 %v1276_v60, %v1971_v12 }
 0x355   :  { %v1279_v4 = vadd.f32 %v1278_v63, %v1271_v1 }
 0x356   :  { %v1284_v0 = vpop.permute.xlu1 %1283 }
 0x357   :  { %v1286_v2 = vmul.f32 %v1284_v0, %v1981_v15 }
 0x359   :  { %v1287_v3 = vadd.f32 %v1286_v2, %v1279_v4 }
 0x35a   :  { %v1292_v5 = vpop.permute.xlu1 %1291 }
 0x35b   :  { %v1294_v6 = vmul.f32 %v1292_v5, %v1986_v16 }
 0x35d   :  { %v1295_v8 = vadd.f32 %v1294_v6, %v1287_v3 }
 0x35e   :  { %v1310_v11 = vpop.permute.xlu1 %1309 }
 0x35f   :  { %1296 = vst.msk [vmem:[#allocation14] sm:$0x3] %vm543_vm6, %v1295_v8 }
 0x360   :  { %1313 = vst.msk [vmem:[#allocation15 - $0x6] sm:$0xc0] %vm1312_vm10, %v1310_v11 }
 0x361   :  { %1318 = vst.msk [vmem:[#allocation15] sm:$0x3] %vm1317_vm11, %v1315_v7 }
 0x362   :  { %1766 = shalt.err (!%p1763_p6)
}
 0x363   :  { %1343 = dma.vmem_to_hbm [thread:$0]  %s1341_s25, 32, %s2206_s17, [#allocation5]   ;;  %vm1327_vm13 = vcmask 54324   ;;  %v1320_v12 = vpop.permute.xlu1 %1319  ;;  %v1325_v15 = vpop.permute.xlu0 %1324  ;;  %vm1332_vm14 = vcmask 64574  }
 0x364   :  { %s1826_s11 = smov [#allocation15]   ;;  %1323 = vst.msk [vmem:[#allocation15 - $0x2] sm:$0xc] %vm1322_vm12, %v1320_v12 }
 0x365   :  { %s1350_s7 = sshll.u32 %s1826_s11, 4  ;;  %1328 = vst.msk [vmem:[#allocation15 - $0x4] sm:$0x30] %vm1327_vm13, %v1325_v15  ;;  %s1351_s7 = int_to_ptr.vmem [resolvable:$true] %s1350_s7 }
 0x366   :  { %s1775_s8 = scalar_lea.vmem %s1351_s7, 32  ;;  %p1780_p8 = scmp.lt.s32.totalorder %s1351_s7, %s1351_s7 }
 0x367   :  { %v1330_v16 = vpop.permute.xlu1 %1329  ;;  %p1776_p7 = scmp.ne.s32.totalorder %s1351_s7, %s1775_s8  ;;  %p1781_p9 = scmp.lt.s32.totalorder %s1775_s8, %s1775_s8 }
 0x368   :  { %1333 = vst.msk [vmem:[#allocation15 - $0x6] sm:$0xc0] %vm1332_vm14, %v1330_v16 }
 0x369   :  { %p1782_p10 = por %p1781_p9, %p1780_p8 }
 0x36b   :  { %p1783_p11 = pnand %p1782_p10, %p1776_p7 }
 0x36d   :  { %1786 = shalt.err (!%p1783_p11)
}
 0x36e   :  { %1353 = dma.vmem_to_hbm [thread:$0]  %s1351_s7, 32, %s2207_s18, [#allocation16]  }
 0x36f   :  { %1803 = dma.done.wait [#allocation5], 32  }
 0x370   :  { %1804 = vsyncadd [#allocation5], 4294967264 }
 0x371   :  { %1805 = dma.done.wait [#allocation16], 32  }
 0x372   :  { %1806 = vsyncadd [#allocation16], 4294967264 }
 0x373   :  { %1360 = vsyncpa [#allocation4], 1 }
 0x374   :  { %1361 = vsyncpa [#allocation7], 1 }
 0x375   :  { %1362 = vsyncpa [#allocation10], 1 }
 0x376   :  { %1363 = vsyncpa [#allocation13], 1 }
 0x377   :  { %1364 = vsyncpa [#allocation5], 1 }
 0x378   :  { %1365 = vsyncpa [#allocation16], 1 }

</bundles_post_ra>
